<compile_context>
chip_gen: v5e
topology: v5e:2x2
jax: 0.10.0
libtpu: 0.0.40
codegen_flags: <defaults>
</compile_context>

<pallas_src>
import jax
import jax.numpy as jnp
from jax.experimental import pallas as pl
from jax.experimental.pallas import tpu as pltpu

# ----------------------------------------------------------------------------
# Small "ViT" configuration (architecturally identical to vit_b_16, scaled down)
# ----------------------------------------------------------------------------
BATCH = 2
IN_CH = 3
IMG = 32            # image size (ViT-B/16 uses 224)
PATCH = 16          # patch size (same as ViT-B/16)
EMB = 64            # hidden dim (ViT-B/16 uses 768)
HEADS = 4           # num heads (ViT-B/16 uses 12)
HEAD_DIM = EMB // HEADS
LAYERS = 2          # encoder depth (ViT-B/16 uses 12)
MLP = 128           # MLP dim (ViT-B/16 uses 3072)
NUM_CLASSES = 10
NUM_CLASSES_PAD = 128            # lane-dense padded head output
N_PATCHES = (IMG // PATCH) ** 2  # 4
SEQ = N_PATCHES + 1              # 5 (+1 class token)
S_PAD = 8                        # sequence padded to a full sublane group
HS = HEADS * S_PAD               # 32 = per-head key slots for all heads
K_PATCH = IN_CH * PATCH * PATCH  # 768
LN_EPS = 1e-6                    # torchvision ViT LayerNorm eps

_SH_S = S_PAD.bit_length() - 1      # log2(S_PAD)
_SH_D = HEAD_DIM.bit_length() - 1   # log2(HEAD_DIM)


# ----------------------------------------------------------------------------
# The fused whole-model kernel (one grid step == one image)
# ----------------------------------------------------------------------------
def vit_kernel(patches_ref, add_ref, patch_w_ref, qkv_w_ref, out_w_ref,
               fc1_w_ref, fc2_w_ref, head_w_ref, lp_ref, fp_ref, o_ref):
    f32 = jnp.float32
    bf16 = jnp.bfloat16

    def mm(x, w, b=None):
        # bf16 x bf16 MXU matmul with f32 accumulation.
        y = jnp.dot(x.astype(bf16), w, preferred_element_type=f32)
        return y if b is None else y + b

    def layernorm(x, g, b):
        mu = jnp.mean(x, axis=-1, keepdims=True)
        xc = x - mu
        var = jnp.mean(xc * xc, axis=-1, keepdims=True)
        return xc * jax.lax.rsqrt(var + LN_EPS) * g + b

    # --- static attention masks, built ONCE and hoisted out of all loops ------
    # blockmask[h*S_PAD+k, c] = 1 iff column c belongs to head h  -> block-diag
    r = jax.lax.broadcasted_iota(jnp.int32, (HS, EMB), 0)
    c = jax.lax.broadcasted_iota(jnp.int32, (HS, EMB), 1)
    blockmask = jnp.where((r >> _SH_S) == (c >> _SH_D), 1.0, 0.0).astype(bf16)
    # groupsum[i, j] = 1 iff i and j are in the same head group -> per-head sum
    rg = jax.lax.broadcasted_iota(jnp.int32, (HS, HS), 0)
    cg = jax.lax.broadcasted_iota(jnp.int32, (HS, HS), 1)
    groupsum = jnp.where((rg >> _SH_S) == (cg >> _SH_S), 1.0, 0.0).astype(bf16)
    # key-padding bias: key slot (c mod S_PAD) >= SEQ is a padded token
    ck = jax.lax.broadcasted_iota(jnp.int32, (S_PAD, HS), 1)
    keybias = jnp.where((ck & (S_PAD - 1)) < SEQ, 0.0, -1e30).astype(f32)

    # --- patch embedding; cls token / pos-emb / patch bias fused via add_ref ---
    h = mm(patches_ref[0], patch_w_ref[...]) + add_ref[...]          # (S_PAD, E) f32

    # --- transformer encoder blocks, fully VMEM-resident (pre-LN, MHSA + MLP) --
    # LAYERS is tiny; at real depth switch to a grid axis ("arbitrary") with
    # index_map (l, ...) on the stacked weights for streamed, double-buffered
    # weights (or lax.fori_loop(unroll=True)).
    for l in range(LAYERS):
        lp = lp_ref[l]                                               # (10, 128) f32
        ln1_g, ln1_b = lp[0:1, :EMB], lp[1:2, :EMB]
        q_b, k_b, v_b = lp[2:3, :EMB], lp[3:4, :EMB], lp[4:5, :EMB]  # q_b pre-scaled
        out_b = lp[5:6, :EMB]
        ln2_g, ln2_b = lp[6:7, :EMB], lp[7:8, :EMB]
        fc2_b = lp[8:9, :EMB]
        fc1_b = lp[9:10, :MLP]

        # ---------------- multi-head self-attention, all heads at once --------
        n1 = layernorm(h, ln1_g, ln1_b)                              # (S_PAD, E)
        q = mm(n1, qkv_w_ref[l, 0], q_b)       # W_q pre-scaled by 1/sqrt(head_dim)
        k = mm(n1, qkv_w_ref[l, 1], k_b)
        v = mm(n1, qkv_w_ref[l, 2], v_b)

        # Block-diagonal replication of K and V: row h*S_PAD+k holds token k's
        # features for head h only (other heads' lanes zeroed).  Sublane concat
        # + static mask, no per-head lane slices.
        k_rep = jnp.concatenate([k.astype(bf16)] * HEADS, axis=0) * blockmask  # (HS, E)
        v_rep = jnp.concatenate([v.astype(bf16)] * HEADS, axis=0) * blockmask  # (HS, E)

        # Scores for every (head, key) pair in ONE matmul: (S_PAD, HS)
        s = jnp.einsum("qd,kd->qk", q.astype(bf16), k_rep,
                       preferred_element_type=f32) + keybias
        # Shared row-max shift (softmax is shift-invariant per head -> exact).
        m = jnp.max(s, axis=-1, keepdims=True)
        p = jnp.exp(s - m)                                           # (S_PAD, HS) f32
        # Per-head denominators, broadcast back to every key slot, via one matmul.
        denom = jnp.dot(p.astype(bf16), groupsum, preferred_element_type=f32)
        pn = (p * pl.reciprocal(denom, approx=True)).astype(bf16)
        # Value matmul directly yields the head-CONCATENATED (S_PAD, E) tile.
        attn = jnp.dot(pn, v_rep, preferred_element_type=f32)
        h = h + mm(attn, out_w_ref[l], out_b)                        # residual 1 (fused)

        # ---------------- MLP -------------------------------------------------
        n2 = layernorm(h, ln2_g, ln2_b)
        # TODO(synk): torch nn.GELU defaults to the exact erf form; the tanh
        # approximation is used here (EUP-friendly on TPU Mosaic).
        hid = jax.nn.gelu(mm(n2, fc1_w_ref[l], fc1_b), approximate=True)
        h = h + mm(hid, fc2_w_ref[l], fc2_b)                         # residual 2 (fused)

    # --- final LN + new classification head ------------------------------------
    # Computed on the full 8-row sublane group (same cost as 1 row); host keeps
    # only the cls row.  Output is lane-dense (128 classes padded, unmasked vst).
    fpv = fp_ref[...]
    hn = layernorm(h, fpv[0:1, :EMB], fpv[1:2, :EMB])
    logits = mm(hn, head_w_ref[...], fpv[2:3, :])                    # (S_PAD, 128)
    o_ref[0] = logits.astype(o_ref.dtype)


# ----------------------------------------------------------------------------
# Parameter init (deterministic, synthetic — no checkpoint load)
# ----------------------------------------------------------------------------
def init_params(key):
    ks = jax.random.split(key, 8)

    def nrm(k, shape, dtype=jnp.float32, scale=0.02):
        return (scale * jax.random.normal(k, shape)).astype(dtype)

    head_w = jnp.zeros((EMB, NUM_CLASSES_PAD), jnp.float32)
    head_w = head_w.at[:, :NUM_CLASSES].set(
        0.02 * jax.random.normal(ks[7], (EMB, NUM_CLASSES)))

    return {
        # patch embedding (Conv2d k=P stride=P == flattened-patch matmul)
        "patch_w": nrm(ks[0], (K_PATCH, EMB), jnp.bfloat16),
        "patch_b": jnp.zeros((EMB,), jnp.float32),
        "cls_token": nrm(ks[1], (EMB,)),
        "pos_emb": nrm(ks[2], (SEQ, EMB)),
        # per-layer weights stacked along a leading LAYERS axis
        "qkv_w": nrm(ks[3], (LAYERS, 3, EMB, EMB), jnp.bfloat16),
        "qkv_b": jnp.zeros((LAYERS, 3, EMB), jnp.float32),
        "out_w": nrm(ks[4], (LAYERS, EMB, EMB), jnp.bfloat16),
        "out_b": jnp.zeros((LAYERS, EMB), jnp.float32),
        "ln1_g": jnp.ones((LAYERS, EMB), jnp.float32),
        "ln1_b": jnp.zeros((LAYERS, EMB), jnp.float32),
        "ln2_g": jnp.ones((LAYERS, EMB), jnp.float32),
        "ln2_b": jnp.zeros((LAYERS, EMB), jnp.float32),
        "fc1_w": nrm(ks[5], (LAYERS, EMB, MLP), jnp.bfloat16),
        "fc1_b": jnp.zeros((LAYERS, MLP), jnp.float32),
        "fc2_w": nrm(ks[6], (LAYERS, MLP, EMB), jnp.bfloat16),
        "fc2_b": jnp.zeros((LAYERS, EMB), jnp.float32),
        # final LN + new Linear head (output padded to 128 lanes)
        "ln_f_g": jnp.ones((EMB,), jnp.float32),
        "ln_f_b": jnp.zeros((EMB,), jnp.float32),
        "head_w": head_w.astype(jnp.bfloat16),
        "head_b": jnp.zeros((NUM_CLASSES_PAD,), jnp.float32),
    }


# ----------------------------------------------------------------------------
# Forward pass (layout plumbing in JAX, the whole hot path in one pallas_call)
# ----------------------------------------------------------------------------
def extract_patches(x):
    """NCHW -> (B, n_patches, C*P*P), matching Conv2d(k=P, stride=P) + flatten."""
    B, C, H, W = x.shape
    nh, nw = H // PATCH, W // PATCH
    x = x.reshape(B, C, nh, PATCH, nw, PATCH)
    x = x.transpose(0, 2, 4, 1, 3, 5)              # (B, nh, nw, C, P, P)
    return x.reshape(B, nh * nw, C * PATCH * PATCH)


def vit_forward(params, x):
    B = x.shape[0]
    bf16, f32 = jnp.bfloat16, jnp.float32
    scale = 1.0 / (HEAD_DIM ** 0.5)

    # Token rows per image, padded to S_PAD and pre-cast to bf16 (row 0 = cls
    # slot of zeros, rows SEQ.. = padding masked out of attention).
    patches = extract_patches(x)                                   # (B, N_PATCH, K)
    patches_pad = jnp.zeros((B, S_PAD, K_PATCH), bf16)
    patches_pad = patches_pad.at[:, 1:SEQ, :].set(patches.astype(bf16))

    # Additive epilogue for the patch matmul: cls token + positional embedding
    # + patch-projection bias fused into a single in-kernel add (batch-invariant).
    add = jnp.zeros((S_PAD, EMB), f32)
    add = add.at[0].set(params["cls_token"] + params["pos_emb"][0])
    add = add.at[1:SEQ].set(params["patch_b"][None, :] + params["pos_emb"][1:SEQ])

    # Fold the attention scale 1/sqrt(head_dim) into W_q / b_q (host-side, free).
    wq = (params["qkv_w"][:, 0].astype(f32) * scale).astype(bf16)
    qkv_w = jnp.concatenate([wq[:, None], params["qkv_w"][:, 1:]], axis=1)

    # Pack ALL small per-layer f32 params into one array -> one DMA descriptor.
    lp = jnp.zeros((LAYERS, 10, 128), f32)
    lp = lp.at[:, 0, :EMB].set(params["ln1_g"])
    lp = lp.at[:, 1, :EMB].set(params["ln1_b"])
    lp = lp.at[:, 2, :EMB].set(params["qkv_b"][:, 0] * scale)      # q bias (scaled)
    lp = lp.at[:, 3, :EMB].set(params["qkv_b"][:, 1])
    lp = lp.at[:, 4, :EMB].set(params["qkv_b"][:, 2])
    lp = lp.at[:, 5, :EMB].set(params["out_b"])
    lp = lp.at[:, 6, :EMB].set(params["ln2_g"])
    lp = lp.at[:, 7, :EMB].set(params["ln2_b"])
    lp = lp.at[:, 8, :EMB].set(params["fc2_b"])
    lp = lp.at[:, 9, :MLP].set(params["fc1_b"])

    fp = jnp.zeros((3, 128), f32)
    fp = fp.at[0, :EMB].set(params["ln_f_g"])
    fp = fp.at[1, :EMB].set(params["ln_f_b"])
    fp = fp.at[2, :].set(params["head_b"])

    inputs = (patches_pad, add, params["patch_w"], qkv_w, params["out_w"],
              params["fc1_w"], params["fc2_w"], params["head_w"], lp, fp)

    def const_spec(shape):
        n = len(shape)
        return pl.BlockSpec(shape, lambda b, _n=n: (0,) * _n)   # weights: fetched once

    in_specs = [
        pl.BlockSpec((1, S_PAD, K_PATCH), lambda b: (b, 0, 0)),  # per-image tokens
        const_spec(add.shape),
        const_spec(params["patch_w"].shape),
        const_spec(qkv_w.shape),
        const_spec(params["out_w"].shape),
        const_spec(params["fc1_w"].shape),
        const_spec(params["fc2_w"].shape),
        const_spec(params["head_w"].shape),
        const_spec(lp.shape),
        const_spec(fp.shape),
    ]

    logits_pad = pl.pallas_call(
        vit_kernel,
        grid=(B,),                                               # batch axis -> 2 TCs on v7x
        in_specs=in_specs,
        out_specs=pl.BlockSpec((1, S_PAD, NUM_CLASSES_PAD), lambda b: (b, 0, 0)),
        out_shape=jax.ShapeDtypeStruct((B, S_PAD, NUM_CLASSES_PAD), f32),
        compiler_params=pltpu.CompilerParams(
            dimension_semantics=("parallel",)),
    )(*inputs)

    # cls row only, un-padded classes.
    return logits_pad[:, 0, :NUM_CLASSES]                        # (B, num_classes)


# ----------------------------------------------------------------------------
if __name__ == "__main__":
    key = jax.random.PRNGKey(0)
    k_param, k_x = jax.random.split(key)
    params = init_params(k_param)
    x = jax.random.normal(k_x, (BATCH, IN_CH, IMG, IMG), dtype=jnp.float32)

    logits = jax.jit(vit_forward)(params, x)
    jax.block_until_ready(logits)
    assert logits.shape == (BATCH, NUM_CLASSES)
    assert bool(jnp.all(jnp.isfinite(logits)))
    print("KERNEL_OK")
</pallas_src>

<mosaic_0001>
module attributes {stable_mosaic.version = 11 : i64} {
  func.func @vit_kernel(%arg0: i32, %arg1: memref<1x8x768xbf16, #tpu.memory_space<vmem>>, %arg2: memref<8x64xf32, #tpu.memory_space<vmem>>, %arg3: memref<768x64xbf16, #tpu.memory_space<vmem>>, %arg4: memref<2x3x64x64xbf16, #tpu.memory_space<vmem>>, %arg5: memref<2x64x64xbf16, #tpu.memory_space<vmem>>, %arg6: memref<2x64x128xbf16, #tpu.memory_space<vmem>>, %arg7: memref<2x128x64xbf16, #tpu.memory_space<vmem>>, %arg8: memref<64x128xbf16, #tpu.memory_space<vmem>>, %arg9: memref<2x10x128xf32, #tpu.memory_space<vmem>>, %arg10: memref<3x128xf32, #tpu.memory_space<vmem>>, %arg11: memref<1x8x128xf32, #tpu.memory_space<vmem>>) attributes {dimension_semantics = [#tpu.dimension_semantics<parallel>], iteration_bounds = array<i64: 2>, scalar_prefetch = 0 : i64, scratch_operands = 0 : i64, tpu.core_type = #tpu.core_type<tc>, window_params = [{transform_indices = @transform_0, window_bounds = array<i64: 1, 8, 768>}, {pipeline_mode = #tpu.pipeline_mode<synchronous>, transform_indices = @transform_1, window_bounds = array<i64: 8, 64>}, {pipeline_mode = #tpu.pipeline_mode<synchronous>, transform_indices = @transform_2, window_bounds = array<i64: 768, 64>}, {pipeline_mode = #tpu.pipeline_mode<synchronous>, transform_indices = @transform_3, window_bounds = array<i64: 2, 3, 64, 64>}, {pipeline_mode = #tpu.pipeline_mode<synchronous>, transform_indices = @transform_4, window_bounds = array<i64: 2, 64, 64>}, {pipeline_mode = #tpu.pipeline_mode<synchronous>, transform_indices = @transform_5, window_bounds = array<i64: 2, 64, 128>}, {pipeline_mode = #tpu.pipeline_mode<synchronous>, transform_indices = @transform_6, window_bounds = array<i64: 2, 128, 64>}, {pipeline_mode = #tpu.pipeline_mode<synchronous>, transform_indices = @transform_7, window_bounds = array<i64: 64, 128>}, {pipeline_mode = #tpu.pipeline_mode<synchronous>, transform_indices = @transform_8, window_bounds = array<i64: 2, 10, 128>}, {pipeline_mode = #tpu.pipeline_mode<synchronous>, transform_indices = @transform_9, window_bounds = array<i64: 3, 128>}, {transform_indices = @transform_10, window_bounds = array<i64: 1, 8, 128>}]} {
    %0 = tpu.iota {dimensions = array<i32: 0>} : vector<32x64xi32>
    %1 = tpu.iota {dimensions = array<i32: 1>} : vector<32x64xi32>
    %c3_i32 = arith.constant 3 : i32
    %2 = vector.broadcast %c3_i32 : i32 to vector<32x64xi32>
    %3 = arith.shrsi %0, %2 : vector<32x64xi32>
    %c4_i32 = arith.constant 4 : i32
    %4 = vector.broadcast %c4_i32 : i32 to vector<32x64xi32>
    %5 = arith.shrsi %1, %4 : vector<32x64xi32>
    %6 = arith.cmpi eq, %3, %5 : vector<32x64xi32>
    %cst = arith.constant 1.000000e+00 : f32
    %cst_0 = arith.constant 0.000000e+00 : f32
    %7 = vector.broadcast %cst : f32 to vector<32x64xf32>
    %8 = vector.broadcast %cst_0 : f32 to vector<32x64xf32>
    %9 = arith.select %6, %7, %8 : vector<32x64xi1>, vector<32x64xf32>
    %10 = arith.truncf %9 : vector<32x64xf32> to vector<32x64xbf16>
    %11 = tpu.iota {dimensions = array<i32: 0>} : vector<32x32xi32>
    %12 = tpu.iota {dimensions = array<i32: 1>} : vector<32x32xi32>
    %c3_i32_1 = arith.constant 3 : i32
    %13 = vector.broadcast %c3_i32_1 : i32 to vector<32x32xi32>
    %14 = arith.shrsi %11, %13 : vector<32x32xi32>
    %c3_i32_2 = arith.constant 3 : i32
    %15 = vector.broadcast %c3_i32_2 : i32 to vector<32x32xi32>
    %16 = arith.shrsi %12, %15 : vector<32x32xi32>
    %17 = arith.cmpi eq, %14, %16 : vector<32x32xi32>
    %cst_3 = arith.constant 1.000000e+00 : f32
    %cst_4 = arith.constant 0.000000e+00 : f32
    %18 = vector.broadcast %cst_3 : f32 to vector<32x32xf32>
    %19 = vector.broadcast %cst_4 : f32 to vector<32x32xf32>
    %20 = arith.select %17, %18, %19 : vector<32x32xi1>, vector<32x32xf32>
    %21 = arith.truncf %20 : vector<32x32xf32> to vector<32x32xbf16>
    %22 = tpu.iota {dimensions = array<i32: 1>} : vector<8x32xi32>
    %c7_i32 = arith.constant 7 : i32
    %23 = vector.broadcast %c7_i32 : i32 to vector<8x32xi32>
    %24 = arith.andi %22, %23 : vector<8x32xi32>
    %c5_i32 = arith.constant 5 : i32
    %25 = vector.broadcast %c5_i32 : i32 to vector<8x32xi32>
    %26 = arith.cmpi slt, %24, %25 : vector<8x32xi32>
    %cst_5 = arith.constant 0.000000e+00 : f32
    %cst_6 = arith.constant -1.000000e+30 : f32
    %27 = vector.broadcast %cst_5 : f32 to vector<8x32xf32>
    %28 = vector.broadcast %cst_6 : f32 to vector<8x32xf32>
    %29 = arith.select %26, %27, %28 : vector<8x32xi1>, vector<8x32xf32>
    %c0 = arith.constant 0 : index
    %c0_7 = arith.constant 0 : index
    %c0_8 = arith.constant 0 : index
    %30 = vector.load %arg1[%c0, %c0_7, %c0_8] : memref<1x8x768xbf16, #tpu.memory_space<vmem>>, vector<1x8x768xbf16>
    %31 = vector.shape_cast %30 : vector<1x8x768xbf16> to vector<8x768xbf16>
    %c0_9 = arith.constant 0 : index
    %c0_10 = arith.constant 0 : index
    %32 = vector.load %arg3[%c0_9, %c0_10] : memref<768x64xbf16, #tpu.memory_space<vmem>>, vector<768x64xbf16>
    %cst_11 = arith.constant dense<0.000000e+00> : vector<8x64xf32>
    %33 = tpu.matmul %31, %32, %cst_11 {dimension_numbers = #tpu.dot_dimension_numbers<[1], [0], [0], [1], [0, 0, 1, 1], [], []>} : vector<8x768xbf16>, vector<768x64xbf16>, vector<8x64xf32> -> vector<8x64xf32>
    %c0_12 = arith.constant 0 : index
    %c0_13 = arith.constant 0 : index
    %34 = vector.load %arg2[%c0_12, %c0_13] : memref<8x64xf32, #tpu.memory_space<vmem>>, vector<8x64xf32>
    %35 = arith.addf %33, %34 : vector<8x64xf32>
    %c0_14 = arith.constant 0 : index
    %c0_15 = arith.constant 0 : index
    %c0_16 = arith.constant 0 : index
    %36 = vector.load %arg9[%c0_14, %c0_15, %c0_16] : memref<2x10x128xf32, #tpu.memory_space<vmem>>, vector<1x10x128xf32>
    %37 = vector.shape_cast %36 : vector<1x10x128xf32> to vector<10x128xf32>
    %38 = vector.extract_strided_slice %37 {offsets = [0, 0], sizes = [1, 64], strides = [1, 1]} : vector<10x128xf32> to vector<1x64xf32>
    %39 = vector.extract_strided_slice %37 {offsets = [1, 0], sizes = [1, 64], strides = [1, 1]} : vector<10x128xf32> to vector<1x64xf32>
    %40 = vector.extract_strided_slice %37 {offsets = [2, 0], sizes = [1, 64], strides = [1, 1]} : vector<10x128xf32> to vector<1x64xf32>
    %41 = vector.extract_strided_slice %37 {offsets = [3, 0], sizes = [1, 64], strides = [1, 1]} : vector<10x128xf32> to vector<1x64xf32>
    %42 = vector.extract_strided_slice %37 {offsets = [4, 0], sizes = [1, 64], strides = [1, 1]} : vector<10x128xf32> to vector<1x64xf32>
    %43 = vector.extract_strided_slice %37 {offsets = [5, 0], sizes = [1, 64], strides = [1, 1]} : vector<10x128xf32> to vector<1x64xf32>
    %44 = vector.extract_strided_slice %37 {offsets = [6, 0], sizes = [1, 64], strides = [1, 1]} : vector<10x128xf32> to vector<1x64xf32>
    %45 = vector.extract_strided_slice %37 {offsets = [7, 0], sizes = [1, 64], strides = [1, 1]} : vector<10x128xf32> to vector<1x64xf32>
    %46 = vector.extract_strided_slice %37 {offsets = [8, 0], sizes = [1, 64], strides = [1, 1]} : vector<10x128xf32> to vector<1x64xf32>
    %47 = vector.extract_strided_slice %37 {offsets = [9, 0], sizes = [1, 128], strides = [1, 1]} : vector<10x128xf32> to vector<1x128xf32>
    %cst_17 = arith.constant dense<0.000000e+00> : vector<8xf32>
    %48 = vector.multi_reduction <add>, %35, %cst_17 [1] : vector<8x64xf32> to vector<8xf32>
    %49 = vector.shape_cast %48 : vector<8xf32> to vector<8x1xf32>
    %cst_18 = arith.constant 6.400000e+01 : f32
    %50 = vector.broadcast %cst_18 : f32 to vector<8x1xf32>
    %51 = arith.divf %49, %50 : vector<8x1xf32>
    %52 = vector.broadcast %51 : vector<8x1xf32> to vector<8x64xf32>
    %53 = arith.subf %35, %52 : vector<8x64xf32>
    %54 = arith.mulf %53, %53 : vector<8x64xf32>
    %cst_19 = arith.constant dense<0.000000e+00> : vector<8xf32>
    %55 = vector.multi_reduction <add>, %54, %cst_19 [1] : vector<8x64xf32> to vector<8xf32>
    %56 = vector.shape_cast %55 : vector<8xf32> to vector<8x1xf32>
    %cst_20 = arith.constant 6.400000e+01 : f32
    %57 = vector.broadcast %cst_20 : f32 to vector<8x1xf32>
    %58 = arith.divf %56, %57 : vector<8x1xf32>
    %cst_21 = arith.constant 9.99999997E-7 : f32
    %59 = vector.broadcast %cst_21 : f32 to vector<8x1xf32>
    %60 = arith.addf %58, %59 : vector<8x1xf32>
    %61 = math.rsqrt %60 : vector<8x1xf32>
    %62 = vector.broadcast %61 : vector<8x1xf32> to vector<8x64xf32>
    %63 = arith.mulf %53, %62 : vector<8x64xf32>
    %64 = vector.broadcast %38 : vector<1x64xf32> to vector<8x64xf32>
    %65 = arith.mulf %63, %64 : vector<8x64xf32>
    %66 = vector.broadcast %39 : vector<1x64xf32> to vector<8x64xf32>
    %67 = arith.addf %65, %66 : vector<8x64xf32>
    %c0_22 = arith.constant 0 : index
    %c0_23 = arith.constant 0 : index
    %c0_24 = arith.constant 0 : index
    %c0_25 = arith.constant 0 : index
    %68 = vector.load %arg4[%c0_22, %c0_23, %c0_24, %c0_25] : memref<2x3x64x64xbf16, #tpu.memory_space<vmem>>, vector<1x1x64x64xbf16>
    %69 = vector.shape_cast %68 : vector<1x1x64x64xbf16> to vector<64x64xbf16>
    %70 = arith.truncf %67 : vector<8x64xf32> to vector<8x64xbf16>
    %cst_26 = arith.constant dense<0.000000e+00> : vector<8x64xf32>
    %71 = tpu.matmul %70, %69, %cst_26 {dimension_numbers = #tpu.dot_dimension_numbers<[1], [0], [0], [1], [0, 0, 1, 1], [], []>} : vector<8x64xbf16>, vector<64x64xbf16>, vector<8x64xf32> -> vector<8x64xf32>
    %72 = vector.broadcast %40 : vector<1x64xf32> to vector<8x64xf32>
    %73 = arith.addf %71, %72 : vector<8x64xf32>
    %c0_27 = arith.constant 0 : index
    %c1 = arith.constant 1 : index
    %c0_28 = arith.constant 0 : index
    %c0_29 = arith.constant 0 : index
    %74 = vector.load %arg4[%c0_27, %c1, %c0_28, %c0_29] : memref<2x3x64x64xbf16, #tpu.memory_space<vmem>>, vector<1x1x64x64xbf16>
    %75 = vector.shape_cast %74 : vector<1x1x64x64xbf16> to vector<64x64xbf16>
    %76 = arith.truncf %67 : vector<8x64xf32> to vector<8x64xbf16>
    %cst_30 = arith.constant dense<0.000000e+00> : vector<8x64xf32>
    %77 = tpu.matmul %76, %75, %cst_30 {dimension_numbers = #tpu.dot_dimension_numbers<[1], [0], [0], [1], [0, 0, 1, 1], [], []>} : vector<8x64xbf16>, vector<64x64xbf16>, vector<8x64xf32> -> vector<8x64xf32>
    %78 = vector.broadcast %41 : vector<1x64xf32> to vector<8x64xf32>
    %79 = arith.addf %77, %78 : vector<8x64xf32>
    %c0_31 = arith.constant 0 : index
    %c2 = arith.constant 2 : index
    %c0_32 = arith.constant 0 : index
    %c0_33 = arith.constant 0 : index
    %80 = vector.load %arg4[%c0_31, %c2, %c0_32, %c0_33] : memref<2x3x64x64xbf16, #tpu.memory_space<vmem>>, vector<1x1x64x64xbf16>
    %81 = vector.shape_cast %80 : vector<1x1x64x64xbf16> to vector<64x64xbf16>
    %82 = arith.truncf %67 : vector<8x64xf32> to vector<8x64xbf16>
    %cst_34 = arith.constant dense<0.000000e+00> : vector<8x64xf32>
    %83 = tpu.matmul %82, %81, %cst_34 {dimension_numbers = #tpu.dot_dimension_numbers<[1], [0], [0], [1], [0, 0, 1, 1], [], []>} : vector<8x64xbf16>, vector<64x64xbf16>, vector<8x64xf32> -> vector<8x64xf32>
    %84 = vector.broadcast %42 : vector<1x64xf32> to vector<8x64xf32>
    %85 = arith.addf %83, %84 : vector<8x64xf32>
    %86 = arith.truncf %79 : vector<8x64xf32> to vector<8x64xbf16>
    %87 = tpu.concatenate %86, %86, %86, %86 in 0 : vector<8x64xbf16>, vector<8x64xbf16>, vector<8x64xbf16>, vector<8x64xbf16> -> vector<32x64xbf16>
    %88 = arith.mulf %87, %10 : vector<32x64xbf16>
    %89 = arith.truncf %85 : vector<8x64xf32> to vector<8x64xbf16>
    %90 = tpu.concatenate %89, %89, %89, %89 in 0 : vector<8x64xbf16>, vector<8x64xbf16>, vector<8x64xbf16>, vector<8x64xbf16> -> vector<32x64xbf16>
    %91 = arith.mulf %90, %10 : vector<32x64xbf16>
    %92 = arith.truncf %73 : vector<8x64xf32> to vector<8x64xbf16>
    "tpu.trace_start"() <{level = 10 : i32, message = "qd,kd->qk"}> : () -> ()
    %cst_35 = arith.constant dense<0.000000e+00> : vector<8x32xf32>
    %93 = tpu.matmul %92, %88, %cst_35 {dimension_numbers = #tpu.dot_dimension_numbers<[1], [1], [0], [0], [0, 0, 1, 0], [], []>} : vector<8x64xbf16>, vector<32x64xbf16>, vector<8x32xf32> -> vector<8x32xf32>
    "tpu.trace_stop"() : () -> ()
    %94 = arith.addf %93, %29 : vector<8x32xf32>
    %cst_36 = arith.constant dense<0xFF800000> : vector<8xf32>
    %95 = vector.multi_reduction <maximumf>, %94, %cst_36 [1] : vector<8x32xf32> to vector<8xf32>
    %96 = vector.shape_cast %95 : vector<8xf32> to vector<8x1xf32>
    %97 = vector.broadcast %96 : vector<8x1xf32> to vector<8x32xf32>
    %98 = arith.subf %94, %97 : vector<8x32xf32>
    %99 = math.exp %98 : vector<8x32xf32>
    %100 = arith.truncf %99 : vector<8x32xf32> to vector<8x32xbf16>
    %cst_37 = arith.constant dense<0.000000e+00> : vector<8x32xf32>
    %101 = tpu.matmul %100, %21, %cst_37 {dimension_numbers = #tpu.dot_dimension_numbers<[1], [0], [0], [1], [0, 0, 1, 1], [], []>} : vector<8x32xbf16>, vector<32x32xbf16>, vector<8x32xf32> -> vector<8x32xf32>
    %102 = tpu.reciprocal %101 {approx = true} : vector<8x32xf32> -> vector<8x32xf32>
    %103 = arith.mulf %99, %102 : vector<8x32xf32>
    %104 = arith.truncf %103 : vector<8x32xf32> to vector<8x32xbf16>
    %cst_38 = arith.constant dense<0.000000e+00> : vector<8x64xf32>
    %105 = tpu.matmul %104, %91, %cst_38 {dimension_numbers = #tpu.dot_dimension_numbers<[1], [0], [0], [1], [0, 0, 1, 1], [], []>} : vector<8x32xbf16>, vector<32x64xbf16>, vector<8x64xf32> -> vector<8x64xf32>
    %c0_39 = arith.constant 0 : index
    %c0_40 = arith.constant 0 : index
    %c0_41 = arith.constant 0 : index
    %106 = vector.load %arg5[%c0_39, %c0_40, %c0_41] : memref<2x64x64xbf16, #tpu.memory_space<vmem>>, vector<1x64x64xbf16>
    %107 = vector.shape_cast %106 : vector<1x64x64xbf16> to vector<64x64xbf16>
    %108 = arith.truncf %105 : vector<8x64xf32> to vector<8x64xbf16>
    %cst_42 = arith.constant dense<0.000000e+00> : vector<8x64xf32>
    %109 = tpu.matmul %108, %107, %cst_42 {dimension_numbers = #tpu.dot_dimension_numbers<[1], [0], [0], [1], [0, 0, 1, 1], [], []>} : vector<8x64xbf16>, vector<64x64xbf16>, vector<8x64xf32> -> vector<8x64xf32>
    %110 = vector.broadcast %43 : vector<1x64xf32> to vector<8x64xf32>
    %111 = arith.addf %109, %110 : vector<8x64xf32>
    %112 = arith.addf %35, %111 : vector<8x64xf32>
    %cst_43 = arith.constant dense<0.000000e+00> : vector<8xf32>
    %113 = vector.multi_reduction <add>, %112, %cst_43 [1] : vector<8x64xf32> to vector<8xf32>
    %114 = vector.shape_cast %113 : vector<8xf32> to vector<8x1xf32>
    %cst_44 = arith.constant 6.400000e+01 : f32
    %115 = vector.broadcast %cst_44 : f32 to vector<8x1xf32>
    %116 = arith.divf %114, %115 : vector<8x1xf32>
    %117 = vector.broadcast %116 : vector<8x1xf32> to vector<8x64xf32>
    %118 = arith.subf %112, %117 : vector<8x64xf32>
    %119 = arith.mulf %118, %118 : vector<8x64xf32>
    %cst_45 = arith.constant dense<0.000000e+00> : vector<8xf32>
    %120 = vector.multi_reduction <add>, %119, %cst_45 [1] : vector<8x64xf32> to vector<8xf32>
    %121 = vector.shape_cast %120 : vector<8xf32> to vector<8x1xf32>
    %cst_46 = arith.constant 6.400000e+01 : f32
    %122 = vector.broadcast %cst_46 : f32 to vector<8x1xf32>
    %123 = arith.divf %121, %122 : vector<8x1xf32>
    %cst_47 = arith.constant 9.99999997E-7 : f32
    %124 = vector.broadcast %cst_47 : f32 to vector<8x1xf32>
    %125 = arith.addf %123, %124 : vector<8x1xf32>
    %126 = math.rsqrt %125 : vector<8x1xf32>
    %127 = vector.broadcast %126 : vector<8x1xf32> to vector<8x64xf32>
    %128 = arith.mulf %118, %127 : vector<8x64xf32>
    %129 = vector.broadcast %44 : vector<1x64xf32> to vector<8x64xf32>
    %130 = arith.mulf %128, %129 : vector<8x64xf32>
    %131 = vector.broadcast %45 : vector<1x64xf32> to vector<8x64xf32>
    %132 = arith.addf %130, %131 : vector<8x64xf32>
    %c0_48 = arith.constant 0 : index
    %c0_49 = arith.constant 0 : index
    %c0_50 = arith.constant 0 : index
    %133 = vector.load %arg6[%c0_48, %c0_49, %c0_50] : memref<2x64x128xbf16, #tpu.memory_space<vmem>>, vector<1x64x128xbf16>
    %134 = vector.shape_cast %133 : vector<1x64x128xbf16> to vector<64x128xbf16>
    %135 = arith.truncf %132 : vector<8x64xf32> to vector<8x64xbf16>
    %cst_51 = arith.constant dense<0.000000e+00> : vector<8x128xf32>
    %136 = tpu.matmul %135, %134, %cst_51 {dimension_numbers = #tpu.dot_dimension_numbers<[1], [0], [0], [1], [0, 0, 1, 1], [], []>} : vector<8x64xbf16>, vector<64x128xbf16>, vector<8x128xf32> -> vector<8x128xf32>
    %137 = vector.broadcast %47 : vector<1x128xf32> to vector<8x128xf32>
    %138 = arith.addf %136, %137 : vector<8x128xf32>
    %139 = arith.mulf %138, %138 : vector<8x128xf32>
    %140 = arith.mulf %138, %139 : vector<8x128xf32>
    %cst_52 = arith.constant 4.471500e-02 : f32
    %141 = vector.broadcast %cst_52 : f32 to vector<8x128xf32>
    %142 = arith.mulf %141, %140 : vector<8x128xf32>
    %143 = arith.addf %138, %142 : vector<8x128xf32>
    %cst_53 = arith.constant 0.797884583 : f32
    %144 = vector.broadcast %cst_53 : f32 to vector<8x128xf32>
    %145 = arith.mulf %144, %143 : vector<8x128xf32>
    %146 = math.tanh %145 : vector<8x128xf32>
    %cst_54 = arith.constant 1.000000e+00 : f32
    %147 = vector.broadcast %cst_54 : f32 to vector<8x128xf32>
    %148 = arith.addf %147, %146 : vector<8x128xf32>
    %cst_55 = arith.constant 5.000000e-01 : f32
    %149 = vector.broadcast %cst_55 : f32 to vector<8x128xf32>
    %150 = arith.mulf %149, %148 : vector<8x128xf32>
    %151 = arith.mulf %138, %150 : vector<8x128xf32>
    %c0_56 = arith.constant 0 : index
    %c0_57 = arith.constant 0 : index
    %c0_58 = arith.constant 0 : index
    %152 = vector.load %arg7[%c0_56, %c0_57, %c0_58] : memref<2x128x64xbf16, #tpu.memory_space<vmem>>, vector<1x128x64xbf16>
    %153 = vector.shape_cast %152 : vector<1x128x64xbf16> to vector<128x64xbf16>
    %154 = arith.truncf %151 : vector<8x128xf32> to vector<8x128xbf16>
    %cst_59 = arith.constant dense<0.000000e+00> : vector<8x64xf32>
    %155 = tpu.matmul %154, %153, %cst_59 {dimension_numbers = #tpu.dot_dimension_numbers<[1], [0], [0], [1], [0, 0, 1, 1], [], []>} : vector<8x128xbf16>, vector<128x64xbf16>, vector<8x64xf32> -> vector<8x64xf32>
    %156 = vector.broadcast %46 : vector<1x64xf32> to vector<8x64xf32>
    %157 = arith.addf %155, %156 : vector<8x64xf32>
    %158 = arith.addf %112, %157 : vector<8x64xf32>
    %c1_60 = arith.constant 1 : index
    %c0_61 = arith.constant 0 : index
    %c0_62 = arith.constant 0 : index
    %159 = vector.load %arg9[%c1_60, %c0_61, %c0_62] : memref<2x10x128xf32, #tpu.memory_space<vmem>>, vector<1x10x128xf32>
    %160 = vector.shape_cast %159 : vector<1x10x128xf32> to vector<10x128xf32>
    %161 = vector.extract_strided_slice %160 {offsets = [0, 0], sizes = [1, 64], strides = [1, 1]} : vector<10x128xf32> to vector<1x64xf32>
    %162 = vector.extract_strided_slice %160 {offsets = [1, 0], sizes = [1, 64], strides = [1, 1]} : vector<10x128xf32> to vector<1x64xf32>
    %163 = vector.extract_strided_slice %160 {offsets = [2, 0], sizes = [1, 64], strides = [1, 1]} : vector<10x128xf32> to vector<1x64xf32>
    %164 = vector.extract_strided_slice %160 {offsets = [3, 0], sizes = [1, 64], strides = [1, 1]} : vector<10x128xf32> to vector<1x64xf32>
    %165 = vector.extract_strided_slice %160 {offsets = [4, 0], sizes = [1, 64], strides = [1, 1]} : vector<10x128xf32> to vector<1x64xf32>
    %166 = vector.extract_strided_slice %160 {offsets = [5, 0], sizes = [1, 64], strides = [1, 1]} : vector<10x128xf32> to vector<1x64xf32>
    %167 = vector.extract_strided_slice %160 {offsets = [6, 0], sizes = [1, 64], strides = [1, 1]} : vector<10x128xf32> to vector<1x64xf32>
    %168 = vector.extract_strided_slice %160 {offsets = [7, 0], sizes = [1, 64], strides = [1, 1]} : vector<10x128xf32> to vector<1x64xf32>
    %169 = vector.extract_strided_slice %160 {offsets = [8, 0], sizes = [1, 64], strides = [1, 1]} : vector<10x128xf32> to vector<1x64xf32>
    %170 = vector.extract_strided_slice %160 {offsets = [9, 0], sizes = [1, 128], strides = [1, 1]} : vector<10x128xf32> to vector<1x128xf32>
    %cst_63 = arith.constant dense<0.000000e+00> : vector<8xf32>
    %171 = vector.multi_reduction <add>, %158, %cst_63 [1] : vector<8x64xf32> to vector<8xf32>
    %172 = vector.shape_cast %171 : vector<8xf32> to vector<8x1xf32>
    %cst_64 = arith.constant 6.400000e+01 : f32
    %173 = vector.broadcast %cst_64 : f32 to vector<8x1xf32>
    %174 = arith.divf %172, %173 : vector<8x1xf32>
    %175 = vector.broadcast %174 : vector<8x1xf32> to vector<8x64xf32>
    %176 = arith.subf %158, %175 : vector<8x64xf32>
    %177 = arith.mulf %176, %176 : vector<8x64xf32>
    %cst_65 = arith.constant dense<0.000000e+00> : vector<8xf32>
    %178 = vector.multi_reduction <add>, %177, %cst_65 [1] : vector<8x64xf32> to vector<8xf32>
    %179 = vector.shape_cast %178 : vector<8xf32> to vector<8x1xf32>
    %cst_66 = arith.constant 6.400000e+01 : f32
    %180 = vector.broadcast %cst_66 : f32 to vector<8x1xf32>
    %181 = arith.divf %179, %180 : vector<8x1xf32>
    %cst_67 = arith.constant 9.99999997E-7 : f32
    %182 = vector.broadcast %cst_67 : f32 to vector<8x1xf32>
    %183 = arith.addf %181, %182 : vector<8x1xf32>
    %184 = math.rsqrt %183 : vector<8x1xf32>
    %185 = vector.broadcast %184 : vector<8x1xf32> to vector<8x64xf32>
    %186 = arith.mulf %176, %185 : vector<8x64xf32>
    %187 = vector.broadcast %161 : vector<1x64xf32> to vector<8x64xf32>
    %188 = arith.mulf %186, %187 : vector<8x64xf32>
    %189 = vector.broadcast %162 : vector<1x64xf32> to vector<8x64xf32>
    %190 = arith.addf %188, %189 : vector<8x64xf32>
    %c1_68 = arith.constant 1 : index
    %c0_69 = arith.constant 0 : index
    %c0_70 = arith.constant 0 : index
    %c0_71 = arith.constant 0 : index
    %191 = vector.load %arg4[%c1_68, %c0_69, %c0_70, %c0_71] : memref<2x3x64x64xbf16, #tpu.memory_space<vmem>>, vector<1x1x64x64xbf16>
    %192 = vector.shape_cast %191 : vector<1x1x64x64xbf16> to vector<64x64xbf16>
    %193 = arith.truncf %190 : vector<8x64xf32> to vector<8x64xbf16>
    %cst_72 = arith.constant dense<0.000000e+00> : vector<8x64xf32>
    %194 = tpu.matmul %193, %192, %cst_72 {dimension_numbers = #tpu.dot_dimension_numbers<[1], [0], [0], [1], [0, 0, 1, 1], [], []>} : vector<8x64xbf16>, vector<64x64xbf16>, vector<8x64xf32> -> vector<8x64xf32>
    %195 = vector.broadcast %163 : vector<1x64xf32> to vector<8x64xf32>
    %196 = arith.addf %194, %195 : vector<8x64xf32>
    %c1_73 = arith.constant 1 : index
    %c1_74 = arith.constant 1 : index
    %c0_75 = arith.constant 0 : index
    %c0_76 = arith.constant 0 : index
    %197 = vector.load %arg4[%c1_73, %c1_74, %c0_75, %c0_76] : memref<2x3x64x64xbf16, #tpu.memory_space<vmem>>, vector<1x1x64x64xbf16>
    %198 = vector.shape_cast %197 : vector<1x1x64x64xbf16> to vector<64x64xbf16>
    %199 = arith.truncf %190 : vector<8x64xf32> to vector<8x64xbf16>
    %cst_77 = arith.constant dense<0.000000e+00> : vector<8x64xf32>
    %200 = tpu.matmul %199, %198, %cst_77 {dimension_numbers = #tpu.dot_dimension_numbers<[1], [0], [0], [1], [0, 0, 1, 1], [], []>} : vector<8x64xbf16>, vector<64x64xbf16>, vector<8x64xf32> -> vector<8x64xf32>
    %201 = vector.broadcast %164 : vector<1x64xf32> to vector<8x64xf32>
    %202 = arith.addf %200, %201 : vector<8x64xf32>
    %c1_78 = arith.constant 1 : index
    %c2_79 = arith.constant 2 : index
    %c0_80 = arith.constant 0 : index
    %c0_81 = arith.constant 0 : index
    %203 = vector.load %arg4[%c1_78, %c2_79, %c0_80, %c0_81] : memref<2x3x64x64xbf16, #tpu.memory_space<vmem>>, vector<1x1x64x64xbf16>
    %204 = vector.shape_cast %203 : vector<1x1x64x64xbf16> to vector<64x64xbf16>
    %205 = arith.truncf %190 : vector<8x64xf32> to vector<8x64xbf16>
    %cst_82 = arith.constant dense<0.000000e+00> : vector<8x64xf32>
    %206 = tpu.matmul %205, %204, %cst_82 {dimension_numbers = #tpu.dot_dimension_numbers<[1], [0], [0], [1], [0, 0, 1, 1], [], []>} : vector<8x64xbf16>, vector<64x64xbf16>, vector<8x64xf32> -> vector<8x64xf32>
    %207 = vector.broadcast %165 : vector<1x64xf32> to vector<8x64xf32>
    %208 = arith.addf %206, %207 : vector<8x64xf32>
    %209 = arith.truncf %202 : vector<8x64xf32> to vector<8x64xbf16>
    %210 = tpu.concatenate %209, %209, %209, %209 in 0 : vector<8x64xbf16>, vector<8x64xbf16>, vector<8x64xbf16>, vector<8x64xbf16> -> vector<32x64xbf16>
    %211 = arith.mulf %210, %10 : vector<32x64xbf16>
    %212 = arith.truncf %208 : vector<8x64xf32> to vector<8x64xbf16>
    %213 = tpu.concatenate %212, %212, %212, %212 in 0 : vector<8x64xbf16>, vector<8x64xbf16>, vector<8x64xbf16>, vector<8x64xbf16> -> vector<32x64xbf16>
    %214 = arith.mulf %213, %10 : vector<32x64xbf16>
    %215 = arith.truncf %196 : vector<8x64xf32> to vector<8x64xbf16>
    "tpu.trace_start"() <{level = 10 : i32, message = "qd,kd->qk"}> : () -> ()
    %cst_83 = arith.constant dense<0.000000e+00> : vector<8x32xf32>
    %216 = tpu.matmul %215, %211, %cst_83 {dimension_numbers = #tpu.dot_dimension_numbers<[1], [1], [0], [0], [0, 0, 1, 0], [], []>} : vector<8x64xbf16>, vector<32x64xbf16>, vector<8x32xf32> -> vector<8x32xf32>
    "tpu.trace_stop"() : () -> ()
    %217 = arith.addf %216, %29 : vector<8x32xf32>
    %cst_84 = arith.constant dense<0xFF800000> : vector<8xf32>
    %218 = vector.multi_reduction <maximumf>, %217, %cst_84 [1] : vector<8x32xf32> to vector<8xf32>
    %219 = vector.shape_cast %218 : vector<8xf32> to vector<8x1xf32>
    %220 = vector.broadcast %219 : vector<8x1xf32> to vector<8x32xf32>
    %221 = arith.subf %217, %220 : vector<8x32xf32>
    %222 = math.exp %221 : vector<8x32xf32>
    %223 = arith.truncf %222 : vector<8x32xf32> to vector<8x32xbf16>
    %cst_85 = arith.constant dense<0.000000e+00> : vector<8x32xf32>
    %224 = tpu.matmul %223, %21, %cst_85 {dimension_numbers = #tpu.dot_dimension_numbers<[1], [0], [0], [1], [0, 0, 1, 1], [], []>} : vector<8x32xbf16>, vector<32x32xbf16>, vector<8x32xf32> -> vector<8x32xf32>
    %225 = tpu.reciprocal %224 {approx = true} : vector<8x32xf32> -> vector<8x32xf32>
    %226 = arith.mulf %222, %225 : vector<8x32xf32>
    %227 = arith.truncf %226 : vector<8x32xf32> to vector<8x32xbf16>
    %cst_86 = arith.constant dense<0.000000e+00> : vector<8x64xf32>
    %228 = tpu.matmul %227, %214, %cst_86 {dimension_numbers = #tpu.dot_dimension_numbers<[1], [0], [0], [1], [0, 0, 1, 1], [], []>} : vector<8x32xbf16>, vector<32x64xbf16>, vector<8x64xf32> -> vector<8x64xf32>
    %c1_87 = arith.constant 1 : index
    %c0_88 = arith.constant 0 : index
    %c0_89 = arith.constant 0 : index
    %229 = vector.load %arg5[%c1_87, %c0_88, %c0_89] : memref<2x64x64xbf16, #tpu.memory_space<vmem>>, vector<1x64x64xbf16>
    %230 = vector.shape_cast %229 : vector<1x64x64xbf16> to vector<64x64xbf16>
    %231 = arith.truncf %228 : vector<8x64xf32> to vector<8x64xbf16>
    %cst_90 = arith.constant dense<0.000000e+00> : vector<8x64xf32>
    %232 = tpu.matmul %231, %230, %cst_90 {dimension_numbers = #tpu.dot_dimension_numbers<[1], [0], [0], [1], [0, 0, 1, 1], [], []>} : vector<8x64xbf16>, vector<64x64xbf16>, vector<8x64xf32> -> vector<8x64xf32>
    %233 = vector.broadcast %166 : vector<1x64xf32> to vector<8x64xf32>
    %234 = arith.addf %232, %233 : vector<8x64xf32>
    %235 = arith.addf %158, %234 : vector<8x64xf32>
    %cst_91 = arith.constant dense<0.000000e+00> : vector<8xf32>
    %236 = vector.multi_reduction <add>, %235, %cst_91 [1] : vector<8x64xf32> to vector<8xf32>
    %237 = vector.shape_cast %236 : vector<8xf32> to vector<8x1xf32>
    %cst_92 = arith.constant 6.400000e+01 : f32
    %238 = vector.broadcast %cst_92 : f32 to vector<8x1xf32>
    %239 = arith.divf %237, %238 : vector<8x1xf32>
    %240 = vector.broadcast %239 : vector<8x1xf32> to vector<8x64xf32>
    %241 = arith.subf %235, %240 : vector<8x64xf32>
    %242 = arith.mulf %241, %241 : vector<8x64xf32>
    %cst_93 = arith.constant dense<0.000000e+00> : vector<8xf32>
    %243 = vector.multi_reduction <add>, %242, %cst_93 [1] : vector<8x64xf32> to vector<8xf32>
    %244 = vector.shape_cast %243 : vector<8xf32> to vector<8x1xf32>
    %cst_94 = arith.constant 6.400000e+01 : f32
    %245 = vector.broadcast %cst_94 : f32 to vector<8x1xf32>
    %246 = arith.divf %244, %245 : vector<8x1xf32>
    %cst_95 = arith.constant 9.99999997E-7 : f32
    %247 = vector.broadcast %cst_95 : f32 to vector<8x1xf32>
    %248 = arith.addf %246, %247 : vector<8x1xf32>
    %249 = math.rsqrt %248 : vector<8x1xf32>
    %250 = vector.broadcast %249 : vector<8x1xf32> to vector<8x64xf32>
    %251 = arith.mulf %241, %250 : vector<8x64xf32>
    %252 = vector.broadcast %167 : vector<1x64xf32> to vector<8x64xf32>
    %253 = arith.mulf %251, %252 : vector<8x64xf32>
    %254 = vector.broadcast %168 : vector<1x64xf32> to vector<8x64xf32>
    %255 = arith.addf %253, %254 : vector<8x64xf32>
    %c1_96 = arith.constant 1 : index
    %c0_97 = arith.constant 0 : index
    %c0_98 = arith.constant 0 : index
    %256 = vector.load %arg6[%c1_96, %c0_97, %c0_98] : memref<2x64x128xbf16, #tpu.memory_space<vmem>>, vector<1x64x128xbf16>
    %257 = vector.shape_cast %256 : vector<1x64x128xbf16> to vector<64x128xbf16>
    %258 = arith.truncf %255 : vector<8x64xf32> to vector<8x64xbf16>
    %cst_99 = arith.constant dense<0.000000e+00> : vector<8x128xf32>
    %259 = tpu.matmul %258, %257, %cst_99 {dimension_numbers = #tpu.dot_dimension_numbers<[1], [0], [0], [1], [0, 0, 1, 1], [], []>} : vector<8x64xbf16>, vector<64x128xbf16>, vector<8x128xf32> -> vector<8x128xf32>
    %260 = vector.broadcast %170 : vector<1x128xf32> to vector<8x128xf32>
    %261 = arith.addf %259, %260 : vector<8x128xf32>
    %262 = arith.mulf %261, %261 : vector<8x128xf32>
    %263 = arith.mulf %261, %262 : vector<8x128xf32>
    %cst_100 = arith.constant 4.471500e-02 : f32
    %264 = vector.broadcast %cst_100 : f32 to vector<8x128xf32>
    %265 = arith.mulf %264, %263 : vector<8x128xf32>
    %266 = arith.addf %261, %265 : vector<8x128xf32>
    %cst_101 = arith.constant 0.797884583 : f32
    %267 = vector.broadcast %cst_101 : f32 to vector<8x128xf32>
    %268 = arith.mulf %267, %266 : vector<8x128xf32>
    %269 = math.tanh %268 : vector<8x128xf32>
    %cst_102 = arith.constant 1.000000e+00 : f32
    %270 = vector.broadcast %cst_102 : f32 to vector<8x128xf32>
    %271 = arith.addf %270, %269 : vector<8x128xf32>
    %cst_103 = arith.constant 5.000000e-01 : f32
    %272 = vector.broadcast %cst_103 : f32 to vector<8x128xf32>
    %273 = arith.mulf %272, %271 : vector<8x128xf32>
    %274 = arith.mulf %261, %273 : vector<8x128xf32>
    %c1_104 = arith.constant 1 : index
    %c0_105 = arith.constant 0 : index
    %c0_106 = arith.constant 0 : index
    %275 = vector.load %arg7[%c1_104, %c0_105, %c0_106] : memref<2x128x64xbf16, #tpu.memory_space<vmem>>, vector<1x128x64xbf16>
    %276 = vector.shape_cast %275 : vector<1x128x64xbf16> to vector<128x64xbf16>
    %277 = arith.truncf %274 : vector<8x128xf32> to vector<8x128xbf16>
    %cst_107 = arith.constant dense<0.000000e+00> : vector<8x64xf32>
    %278 = tpu.matmul %277, %276, %cst_107 {dimension_numbers = #tpu.dot_dimension_numbers<[1], [0], [0], [1], [0, 0, 1, 1], [], []>} : vector<8x128xbf16>, vector<128x64xbf16>, vector<8x64xf32> -> vector<8x64xf32>
    %279 = vector.broadcast %169 : vector<1x64xf32> to vector<8x64xf32>
    %280 = arith.addf %278, %279 : vector<8x64xf32>
    %281 = arith.addf %235, %280 : vector<8x64xf32>
    %c0_108 = arith.constant 0 : index
    %c0_109 = arith.constant 0 : index
    %282 = vector.load %arg10[%c0_108, %c0_109] : memref<3x128xf32, #tpu.memory_space<vmem>>, vector<3x128xf32>
    %283 = vector.extract_strided_slice %282 {offsets = [0, 0], sizes = [1, 64], strides = [1, 1]} : vector<3x128xf32> to vector<1x64xf32>
    %284 = vector.extract_strided_slice %282 {offsets = [1, 0], sizes = [1, 64], strides = [1, 1]} : vector<3x128xf32> to vector<1x64xf32>
    %cst_110 = arith.constant dense<0.000000e+00> : vector<8xf32>
    %285 = vector.multi_reduction <add>, %281, %cst_110 [1] : vector<8x64xf32> to vector<8xf32>
    %286 = vector.shape_cast %285 : vector<8xf32> to vector<8x1xf32>
    %cst_111 = arith.constant 6.400000e+01 : f32
    %287 = vector.broadcast %cst_111 : f32 to vector<8x1xf32>
    %288 = arith.divf %286, %287 : vector<8x1xf32>
    %289 = vector.broadcast %288 : vector<8x1xf32> to vector<8x64xf32>
    %290 = arith.subf %281, %289 : vector<8x64xf32>
    %291 = arith.mulf %290, %290 : vector<8x64xf32>
    %cst_112 = arith.constant dense<0.000000e+00> : vector<8xf32>
    %292 = vector.multi_reduction <add>, %291, %cst_112 [1] : vector<8x64xf32> to vector<8xf32>
    %293 = vector.shape_cast %292 : vector<8xf32> to vector<8x1xf32>
    %cst_113 = arith.constant 6.400000e+01 : f32
    %294 = vector.broadcast %cst_113 : f32 to vector<8x1xf32>
    %295 = arith.divf %293, %294 : vector<8x1xf32>
    %cst_114 = arith.constant 9.99999997E-7 : f32
    %296 = vector.broadcast %cst_114 : f32 to vector<8x1xf32>
    %297 = arith.addf %295, %296 : vector<8x1xf32>
    %298 = math.rsqrt %297 : vector<8x1xf32>
    %299 = vector.broadcast %298 : vector<8x1xf32> to vector<8x64xf32>
    %300 = arith.mulf %290, %299 : vector<8x64xf32>
    %301 = vector.broadcast %283 : vector<1x64xf32> to vector<8x64xf32>
    %302 = arith.mulf %300, %301 : vector<8x64xf32>
    %303 = vector.broadcast %284 : vector<1x64xf32> to vector<8x64xf32>
    %304 = arith.addf %302, %303 : vector<8x64xf32>
    %c0_115 = arith.constant 0 : index
    %c0_116 = arith.constant 0 : index
    %305 = vector.load %arg8[%c0_115, %c0_116] : memref<64x128xbf16, #tpu.memory_space<vmem>>, vector<64x128xbf16>
    %306 = vector.extract_strided_slice %282 {offsets = [2, 0], sizes = [1, 128], strides = [1, 1]} : vector<3x128xf32> to vector<1x128xf32>
    %307 = arith.truncf %304 : vector<8x64xf32> to vector<8x64xbf16>
    %cst_117 = arith.constant dense<0.000000e+00> : vector<8x128xf32>
    %308 = tpu.matmul %307, %305, %cst_117 {dimension_numbers = #tpu.dot_dimension_numbers<[1], [0], [0], [1], [0, 0, 1, 1], [], []>} : vector<8x64xbf16>, vector<64x128xbf16>, vector<8x128xf32> -> vector<8x128xf32>
    %309 = vector.broadcast %306 : vector<1x128xf32> to vector<8x128xf32>
    %310 = arith.addf %308, %309 : vector<8x128xf32>
    %c0_118 = arith.constant 0 : index
    %c0_119 = arith.constant 0 : index
    %c0_120 = arith.constant 0 : index
    %311 = vector.load %arg11[%c0_118, %c0_119, %c0_120] : memref<1x8x128xf32, #tpu.memory_space<vmem>>, vector<1x8x128xf32>
    %312 = vector.shape_cast %311 : vector<1x8x128xf32> to vector<8x128xf32>
    %313 = vector.shape_cast %310 : vector<8x128xf32> to vector<1x8x128xf32>
    tpu.vector_store %arg11[%c0_118, %c0_119, %c0_120], %313 {strides = array<i32>} : memref<1x8x128xf32, #tpu.memory_space<vmem>>, vector<1x8x128xf32>,
    return
  }
  func.func @transform_0(%arg0: i32) -> (i32, i32, i32) {
    %c0_i32 = arith.constant 0 : i32
    %c0_i32_0 = arith.constant 0 : i32
    %c0_i32_1 = arith.constant 0 : i32
    return %arg0, %c0_i32, %c0_i32_0 : i32, i32, i32
  }
  func.func @transform_1(%arg0: i32) -> (i32, i32) {
    %c0_i32 = arith.constant 0 : i32
    %c0_i32_0 = arith.constant 0 : i32
    %c0_i32_1 = arith.constant 0 : i32
    return %c0_i32, %c0_i32_0 : i32, i32
  }
  func.func @transform_2(%arg0: i32) -> (i32, i32) {
    %c0_i32 = arith.constant 0 : i32
    %c0_i32_0 = arith.constant 0 : i32
    %c0_i32_1 = arith.constant 0 : i32
    return %c0_i32, %c0_i32_0 : i32, i32
  }
  func.func @transform_3(%arg0: i32) -> (i32, i32, i32, i32) {
    %c0_i32 = arith.constant 0 : i32
    %c0_i32_0 = arith.constant 0 : i32
    %c0_i32_1 = arith.constant 0 : i32
    %c0_i32_2 = arith.constant 0 : i32
    %c0_i32_3 = arith.constant 0 : i32
    return %c0_i32, %c0_i32_0, %c0_i32_1, %c0_i32_2 : i32, i32, i32, i32
  }
  func.func @transform_4(%arg0: i32) -> (i32, i32, i32) {
    %c0_i32 = arith.constant 0 : i32
    %c0_i32_0 = arith.constant 0 : i32
    %c0_i32_1 = arith.constant 0 : i32
    %c0_i32_2 = arith.constant 0 : i32
    return %c0_i32, %c0_i32_0, %c0_i32_1 : i32, i32, i32
  }
  func.func @transform_5(%arg0: i32) -> (i32, i32, i32) {
    %c0_i32 = arith.constant 0 : i32
    %c0_i32_0 = arith.constant 0 : i32
    %c0_i32_1 = arith.constant 0 : i32
    %c0_i32_2 = arith.constant 0 : i32
    return %c0_i32, %c0_i32_0, %c0_i32_1 : i32, i32, i32
  }
  func.func @transform_6(%arg0: i32) -> (i32, i32, i32) {
    %c0_i32 = arith.constant 0 : i32
    %c0_i32_0 = arith.constant 0 : i32
    %c0_i32_1 = arith.constant 0 : i32
    %c0_i32_2 = arith.constant 0 : i32
    return %c0_i32, %c0_i32_0, %c0_i32_1 : i32, i32, i32
  }
  func.func @transform_7(%arg0: i32) -> (i32, i32) {
    %c0_i32 = arith.constant 0 : i32
    %c0_i32_0 = arith.constant 0 : i32
    %c0_i32_1 = arith.constant 0 : i32
    return %c0_i32, %c0_i32_0 : i32, i32
  }
  func.func @transform_8(%arg0: i32) -> (i32, i32, i32) {
    %c0_i32 = arith.constant 0 : i32
    %c0_i32_0 = arith.constant 0 : i32
    %c0_i32_1 = arith.constant 0 : i32
    %c0_i32_2 = arith.constant 0 : i32
    return %c0_i32, %c0_i32_0, %c0_i32_1 : i32, i32, i32
  }
  func.func @transform_9(%arg0: i32) -> (i32, i32) {
    %c0_i32 = arith.constant 0 : i32
    %c0_i32_0 = arith.constant 0 : i32
    %c0_i32_1 = arith.constant 0 : i32
    return %c0_i32, %c0_i32_0 : i32, i32
  }
  func.func @transform_10(%arg0: i32) -> (i32, i32, i32) {
    %c0_i32 = arith.constant 0 : i32
    %c0_i32_0 = arith.constant 0 : i32
    %c0_i32_1 = arith.constant 0 : i32
    return %arg0, %c0_i32, %c0_i32_0 : i32, i32, i32
  }
}

</mosaic_0001>

<bundles_post_ra>
// kernel: vit_forward.1
= control target key start
LH: loop header
LB: loop body
LE: loop exit
PB: predicated region body
PF: predicated region fallthrough
CT: control target
= control target key end

     0   :  { %s2756_s13 = smov 0   ;;  %s3321_s0 = inlined_call_operand.vmem [shape: bf16[2,8,768], index: 0, kind: input, shape index: {}]   ;;  %s3322_s1 = inlined_call_operand.vmem [shape: f32[8,64], index: 1, kind: input, shape index: {}]   ;;  %s3323_s2 = inlined_call_operand.vmem [shape: bf16[768,64], index: 2, kind: input, shape index: {}]   ;;  %s3324_s3 = inlined_call_operand.vmem [shape: bf16[2,3,64,64], index: 3, kind: input, shape index: {}]   ;;  %s3325_s4 = inlined_call_operand.vmem [shape: bf16[2,64,64], index: 4, kind: input, shape index: {}]   ;;  %s3326_s5 = inlined_call_operand.vmem [shape: bf16[2,64,128], index: 5, kind: input, shape index: {}]   ;;  %s3327_s6 = inlined_call_operand.vmem [shape: bf16[2,128,64], index: 6, kind: input, shape index: {}]   ;;  %s3328_s7 = inlined_call_operand.vmem [shape: bf16[64,128], index: 7, kind: input, shape index: {}]   ;;  %s3329_s8 = inlined_call_operand.vmem [shape: f32[2,10,128], index: 8, kind: input, shape index: {}]   ;;  %s3330_s9 = inlined_call_operand.vmem [shape: f32[3,128], index: 9, kind: input, shape index: {}]   ;;  %s3331_s10 = inlined_call_operand.vmem [shape: f32[2,8,128], index: 10, kind: output, shape index: {}]  }
   0x1 LB: > { %s2004_s14 = sadd.s32 4294967295, %s2695_s13   ;;  %p2008_p0 = scmp.ge.s32.totalorder %s2695_s13, 1  ;;  %s2695_s13 = sphi %s2756_s13, %s20_s13  }
   0x2   : > { %p312_p1 = scmp.lt.s32.totalorder %s2695_s13, 3 }
   0x4   : > { %p313_p2 = pnand %p2008_p0, %p312_p1 }
   0x5   : > { %p349_p3 = scmp.lt.s32.totalorder (!%p313_p2), %s2004_s14, 1 }
   0x6   : > { %316 = sbr.rel (%p313_p2) target bundleno = 3929 (0xf59), region = 60 }
   0xb   : > { %v2551_v0 = vld [vmem:[%s3323_s2 + $0x38] sm:$0xff]  ;;  %v2550_v2 = vld [vmem:[%s3323_s2 + $0x30] sm:$0xff]  ;;  %v2549_v8 = vld [vmem:[%s3323_s2 + $0x28] sm:$0xff]  ;;  %s3341_s14 = smov (!%p349_p3, %s2004_s14), 1  ;;  %vm886_vm0 = vcmask 523264   ;;  %vm1068_vm5 = vcmask 1043456  }
   0xc   : > { %v2559_v1 = vld [vmem:[%s3323_s2 + $0x78] sm:$0xff]  ;;  %806 = vmatpush.bf16.msra.mxu0 %v2551_v0  ;;  %v2558_v3 = vld [vmem:[%s3323_s2 + $0x70] sm:$0xff]  ;;  %v2557_v9 = vld [vmem:[%s3323_s2 + $0x68] sm:$0xff]  ;;  %s2652_s15 = smul.u32 24, %s3341_s14  ;;  %vm1124_vm14 = vcmask 261120  }
   0xd   : > { %819 = vmatpush.bf16.msra.mxu1 %v2559_v1  ;;  %v2567_v4 = vld [vmem:[%s3323_s2 + $0xb8] sm:$0xff]  ;;  %v2566_v6 = vld [vmem:[%s3323_s2 + $0xb0] sm:$0xff]  ;;  %v2565_v10 = vld [vmem:[%s3323_s2 + $0xa8] sm:$0xff] }
   0xe   : > { %v2575_v5 = vld [vmem:[%s3323_s2 + $0xf8] sm:$0xff]  ;;  %832 = vmatpush.bf16.msra.mxu2 %v2567_v4  ;;  %v2574_v7 = vld [vmem:[%s3323_s2 + $0xf0] sm:$0xff]  ;;  %v2573_v11 = vld [vmem:[%s3323_s2 + $0xe8] sm:$0xff]  ;;  %s2840_s26 = scalar_lea.vmem %s3321_s0, %s2652_s15  ;;  %s2010_s15 = sshll.u32 %s3341_s14, 3 }
   0xf   : > { %845 = vmatpush.bf16.msra.mxu3 %v2575_v5  ;;  %v2548_v12 = vld [vmem:[%s3323_s2 + $0x20] sm:$0xff]  ;;  %v2547_v16 = vld [vmem:[%s3323_s2 + $0x18] sm:$0xff]  ;;  %v2546_v20 = vld [vmem:[%s3323_s2 + $0x10] sm:$0xff]  ;;  %s357_s18 = scalar_lea.vmem %s3331_s10, %s2010_s15 }
  0x10   : > { %807 = vmatpush.bf16.msra.mxu0 %v2550_v2  ;;  %v2556_v13 = vld [vmem:[%s3323_s2 + $0x60] sm:$0xff]  ;;  %v2555_v17 = vld [vmem:[%s3323_s2 + $0x58] sm:$0xff]  ;;  %v2554_v21 = vld [vmem:[%s3323_s2 + $0x50] sm:$0xff] }
  0x11   : > { %820 = vmatpush.bf16.msra.mxu1 %v2558_v3  ;;  %v2564_v14 = vld [vmem:[%s3323_s2 + $0xa0] sm:$0xff]  ;;  %v2563_v18 = vld [vmem:[%s3323_s2 + $0x98] sm:$0xff]  ;;  %v2562_v22 = vld [vmem:[%s3323_s2 + $0x90] sm:$0xff] }
  0x12   : > { %833 = vmatpush.bf16.msra.mxu2 %v2566_v6  ;;  %v2572_v15 = vld [vmem:[%s3323_s2 + $0xe0] sm:$0xff]  ;;  %v2571_v19 = vld [vmem:[%s3323_s2 + $0xd8] sm:$0xff]  ;;  %v2570_v23 = vld [vmem:[%s3323_s2 + $0xd0] sm:$0xff] }
  0x13   : > { %846 = vmatpush.bf16.msra.mxu3 %v2574_v7  ;;  %v2545_v24 = vld [vmem:[%s3323_s2 + $0x8] sm:$0xff]  ;;  %v397_v26 = vld [vmem:[%s2840_s26] sm:$0xff]  ;;  %v2583_v34 = vld [vmem:[%s3323_s2 + $0x138] sm:$0xff] }
  0x14   : > { %808 = vmatpush.bf16.msra.mxu0 %v2549_v8  ;;  %v2553_v25 = vld [vmem:[%s3323_s2 + $0x48] sm:$0xff]  ;;  %v500_v28 = vunpack.c.l.b16 %v397_v26  ;;  %v501_v30 = vunpack.c.h.b16 %v397_v26  ;;  %v2544_v32 = vld [vmem:[%s3323_s2] sm:$0xff]  ;;  %v2591_v35 = vld [vmem:[%s3323_s2 + $0x178] sm:$0xff] }
  0x15   : > { %821 = vmatpush.bf16.msra.mxu1 %v2557_v9  ;;  %v2561_v27 = vld [vmem:[%s3323_s2 + $0x88] sm:$0xff]  ;;  %v2552_v33 = vld [vmem:[%s3323_s2 + $0x40] sm:$0xff]  ;;  %v2582_v42 = vld [vmem:[%s3323_s2 + $0x130] sm:$0xff] }
  0x16   : > { %834 = vmatpush.bf16.msra.mxu2 %v2565_v10  ;;  %v2569_v29 = vld [vmem:[%s3323_s2 + $0xc8] sm:$0xff]  ;;  %v2560_v36 = vld [vmem:[%s3323_s2 + $0x80] sm:$0xff]  ;;  %v506_v38 = vpack.c.b16 %v500_v28, %v500_v28  ;;  %v507_v39 = vpack.c.b16 %v501_v30, %v501_v30  ;;  %v2590_v43 = vld [vmem:[%s3323_s2 + $0x170] sm:$0xff] }
  0x17   : > { %847 = vmatpush.bf16.msra.mxu3 %v2573_v11  ;;  %v398_v31 = vld [vmem:[%s2840_s26 + $0x8] sm:$0xff]  ;;  %v2568_v41 = vld [vmem:[%s3323_s2 + $0xc0] sm:$0xff]  ;;  %v2579_v50 = vld [vmem:[%s3323_s2 + $0x118] sm:$0xff] }
  0x18   : > { %809 = vmatpush.bf16.msra.mxu0 %v2548_v12  ;;  %v502_v37 = vunpack.c.l.b16 %v398_v31  ;;  %v503_v40 = vunpack.c.h.b16 %v398_v31  ;;  %v2581_v46 = vld [vmem:[%s3323_s2 + $0x128] sm:$0xff]  ;;  %v2580_v48 = vld [vmem:[%s3323_s2 + $0x120] sm:$0xff]  ;;  %v2587_v51 = vld [vmem:[%s3323_s2 + $0x158] sm:$0xff] }
  0x19   : > { %822 = vmatpush.bf16.msra.mxu1 %v2556_v13  ;;  %v2589_v47 = vld [vmem:[%s3323_s2 + $0x168] sm:$0xff]  ;;  %v2588_v49 = vld [vmem:[%s3323_s2 + $0x160] sm:$0xff]  ;;  %v2578_v52 = vld [vmem:[%s3323_s2 + $0x110] sm:$0xff] }
  0x1a   : > { %835 = vmatpush.bf16.msra.mxu2 %v2564_v14  ;;  %v508_v44 = vpack.c.b16 %v502_v37, %v502_v37  ;;  %v509_v45 = vpack.c.b16 %v503_v40, %v503_v40  ;;  %v2586_v53 = vld [vmem:[%s3323_s2 + $0x150] sm:$0xff]  ;;  %v2577_v54 = vld [vmem:[%s3323_s2 + $0x108] sm:$0xff]  ;;  %v2576_v59 = vld [vmem:[%s3323_s2 + $0x100] sm:$0xff] }
  0x1b   : > { %848 = vmatpush.bf16.msra.mxu3 %v2572_v15  ;;  %v2585_v55 = vld [vmem:[%s3323_s2 + $0x148] sm:$0xff]  ;;  %v399_v56 = vld [vmem:[%s2840_s26 + $0x10] sm:$0xff]  ;;  %v2584_v60 = vld [vmem:[%s3323_s2 + $0x140] sm:$0xff] }
  0x1c   : > { %810 = vmatpush.bf16.msra.mxu0 %v2547_v16  ;;  %v504_v57 = vunpack.c.l.b16 %v399_v56  ;;  %v505_v58 = vunpack.c.h.b16 %v399_v56  ;;  %v496_v5 = vld [vmem:[%s3322_s1] sm:$0xff]  ;;  %v2595_v31 = vld [vmem:[%s3324_s3 + $0x18] sm:$0xff] }
  0x1d   : > { %823 = vmatpush.bf16.msra.mxu1 %v2555_v17  ;;  %v2592_v37 = vld [vmem:[%s3324_s3] sm:$0xff] }
  0x1e   : > { %836 = vmatpush.bf16.msra.mxu2 %v2563_v18  ;;  %v510_v61 = vpack.c.b16 %v504_v57, %v504_v57  ;;  %v511_v62 = vpack.c.b16 %v505_v58, %v505_v58 }
  0x1f   : > { %849 = vmatpush.bf16.msra.mxu3 %v2571_v19  ;;  %v2697_v19 = vmov 64.0  }
  0x20   : > { %811 = vmatpush.bf16.msra.mxu0 %v2546_v20  ;;  %2665 = vrcp.f32 %v2697_v19 }
  0x21   : > { %824 = vmatpush.bf16.msra.mxu1 %v2554_v21 }
  0x22   : > { %837 = vmatpush.bf16.msra.mxu2 %v2562_v22 }
  0x23   : > { %850 = vmatpush.bf16.msra.mxu3 %v2570_v23 }
  0x24   : > { %812 = vmatpush.bf16.msra.mxu0 %v2545_v24 }
  0x25   : > { %825 = vmatpush.bf16.msra.mxu1 %v2553_v25 }
  0x26   : > { %838 = vmatpush.bf16.msra.mxu2 %v2561_v27  ;;  %v2666_v20 = vpop.eup %2665 }
  0x27   : > { %851 = vmatpush.bf16.msra.mxu3 %v2569_v29  ;;  %v891_v21 = vmul.f32 64.0, %v2666_v20  ;;  %vm895_vm1 = vweird.f32 %v2666_v20 }
  0x28   : > { %813 = vmatpush.bf16.msra.mxu0 %v2544_v32  ;;  %v2599_v32 = vld [vmem:[%s3324_s3 + $0x38] sm:$0xff] }
  0x29   : > { %826 = vmatpush.bf16.msra.mxu1 %v2552_v33  ;;  %v892_v22 = vsub.f32 1.0, %v891_v21  ;;  %v2594_v33 = vld [vmem:[%s3324_s3 + $0x10] sm:$0xff] }
  0x2a   : > { %839 = vmatpush.bf16.msra.mxu2 %v2560_v36  ;;  %v2597_v36 = vld [vmem:[%s3324_s3 + $0x28] sm:$0xff] }
  0x2b   : > { %814 = vmatmul.bf16.vlgmr.msra.gmra.mxu0 %v506_v38  ;;  %852 = vmatpush.bf16.msra.mxu3 %v2568_v41  ;;  %v893_v23 = vmul.f32 %v2666_v20, %v892_v22  ;;  %v2596_v38 = vld [vmem:[%s3324_s3 + $0x20] sm:$0xff]  ;;  %v2602_v41 = vld [vmem:[%s3324_s3 + $0x50] sm:$0xff] }
  0x2c   : > { %858 = vmatpush.bf16.msrb.mxu0 %v2583_v34  ;;  %827 = vmatmul.bf16.vlgmr.msra.gmra.mxu1 %v507_v39  ;;  %v2598_v34 = vld [vmem:[%s3324_s3 + $0x30] sm:$0xff]  ;;  %v2603_v39 = vld [vmem:[%s3324_s3 + $0x58] sm:$0xff] }
  0x2d   : > { %871 = vmatpush.bf16.msrb.mxu1 %v2591_v35  ;;  %840 = vmatmul.bf16.vlgmr.msra.gmra.mxu2 %v508_v44  ;;  %v894_v24 = vadd.f32 %v2666_v20, %v893_v23  ;;  %v2593_v35 = vld [vmem:[%s3324_s3 + $0x8] sm:$0xff] }
  0x2e   : > { %853 = vmatmul.bf16.vlgmr.msra.gmra.mxu3 %v509_v45  ;;  %961 = vmatpush.bf16.msrb.mxu2 %v2595_v31  ;;  %v2601_v44 = vld [vmem:[%s3324_s3 + $0x48] sm:$0xff]  ;;  %v2600_v45 = vld [vmem:[%s3324_s3 + $0x40] sm:$0xff] }
  0x2f   : > { %v2930_v25 = vsel %vm895_vm1, %v2666_v20, %v894_v24  ;;  %1008 = vmatpush.bf16.msrb.mxu3 %v2599_v32 }
  0x30   : > { %859 = vmatpush.bf16.msrb.mxu0 %v2582_v42 }
  0x31   : > { %872 = vmatpush.bf16.msrb.mxu1 %v2590_v43 }
  0x32   : > { %962 = vmatpush.bf16.msrb.mxu2 %v2594_v33 }
  0x33   : > { %1009 = vmatpush.bf16.msrb.mxu3 %v2598_v34 }
  0x34   : > { %860 = vmatpush.bf16.msrb.mxu0 %v2581_v46 }
  0x35   : > { %873 = vmatpush.bf16.msrb.mxu1 %v2589_v47 }
  0x36   : > { %963 = vmatpush.bf16.msrb.mxu2 %v2593_v35 }
  0x37   : > { %1010 = vmatpush.bf16.msrb.mxu3 %v2597_v36 }
  0x38   : > { %861 = vmatpush.bf16.msrb.mxu0 %v2580_v48 }
  0x39   : > { %874 = vmatpush.bf16.msrb.mxu1 %v2588_v49 }
  0x3a   : > { %964 = vmatpush.bf16.msrb.mxu2 %v2592_v37 }
  0x3b   : > { %1011 = vmatpush.bf16.msrb.mxu3 %v2596_v38 }
  0x3c   : > { %862 = vmatpush.bf16.msrb.mxu0 %v2579_v50 }
  0x3d   : > { %875 = vmatpush.bf16.msrb.mxu1 %v2587_v51  ;;  %v2975_v51 = vld [vmem:[%s3329_s8] sm:$0xff] }
  0x3e   : > { %1055 = vmatpush.bf16.msra.mxu2 %v2603_v39  ;;  %v918_v56 = vperm.slane %v2975_v51, 1  ;;  %v929_v38 = vperm.slane %v2975_v51, 2 }
  0x40   : > { %863 = vmatpush.bf16.msrb.mxu0 %v2578_v52 }
  0x41   : > { %876 = vmatpush.bf16.msrb.mxu1 %v2586_v53  ;;  %v916_v53 = vperm.slane %v2975_v51, 0 }
  0x42   : > { %1056 = vmatpush.bf16.msra.mxu2 %v2602_v41 }
  0x44   : > { %864 = vmatpush.bf16.msrb.mxu0 %v2577_v54 }
  0x45   : > { %877 = vmatpush.bf16.msrb.mxu1 %v2585_v55 }
  0x46   : > { %1057 = vmatpush.bf16.msra.mxu2 %v2601_v44 }
  0x48   : > { %865 = vmatpush.bf16.msrb.mxu0 %v2576_v59 }
  0x49   : > { %878 = vmatpush.bf16.msrb.mxu1 %v2584_v60  ;;  %v359_v60 = vlaneseq }
  0x4a   : > { %1058 = vmatpush.bf16.msra.mxu2 %v2600_v45 }
  0x4b   : > { %866 = vmatmul.bf16.vlgmr.msrb.gmra.mxu0 %v510_v61  ;;  %v2982_v61 = vshrl.u32 %v359_v60, 7 }
  0x4c   : > { %879 = vmatmul.bf16.vlgmr.msrb.gmra.mxu1 %v511_v62  ;;  %v979_v62 = vperm.slane %v2975_v51, 3 }
  0xa8   : > { %v815_v63 = vpop.f32.mrf.mxu0 }
  0xa9   : > { %v828_v0 = vpop.f32.mrf.mxu1  ;;  %v816_v6 = vadd.f32 %v815_v63, %v496_v5  ;;  %v2986_v63 = vadd.s32 16, %v2982_v61 }
  0xab   : > { %v829_v9 = vadd.f32 %v828_v0, %v816_v6  ;;  %v2989_v0 = vadd.s32 24, %v2982_v61  ;;  %v368_v5 = vshra.s32 %v2986_v63, 3 }
  0xad   : > { %v369_v6 = vshra.s32 %v2989_v0, 3 }
  0xb0   : > { %v817_v1 = vpop.f32.mrf.mxu0  ;;  %v841_v3 = vpop.f32.mrf.mxu2 }
  0xb1   : > { %v830_v2 = vpop.f32.mrf.mxu1  ;;  %v854_v4 = vpop.f32.mrf.mxu3  ;;  %v842_v10 = vadd.f32 %v841_v3, %v829_v9  ;;  %v2991_v1 = vand.u32 127, %v359_v60 }
  0xb3   : > { %v855_v11 = vadd.f32 %v854_v4, %v842_v10 }
  0xb8   : > { %v843_v7 = vpop.f32.mrf.mxu2 }
  0xb9   : > { %v856_v8 = vpop.f32.mrf.mxu3  ;;  %v370_v7 = vshra.s32 %v2991_v1, 4 }
  0xba   : > { %v2997_v8 = vadd.s32 8, %v2982_v61 }
  0xbb   : > { %vm373_vm6 = vcmp.eq.s32.totalorder %v368_v5, %v370_v7  ;;  %vm374_vm7 = vcmp.eq.s32.totalorder %v369_v6, %v370_v7 }
  0xc8   : > { %v867_v12 = vpop.f32.mrf.mxu0 }
  0xc9   : > { %v880_v13 = vpop.f32.mrf.mxu1  ;;  %v868_v14 = vadd.f32 %v867_v12, %v855_v11  ;;  %v366_v11 = vshra.s32 %v2982_v61, 3  ;;  %v367_v12 = vshra.s32 %v2997_v8, 3  ;;  %v2607_v8 = vld [vmem:[%s3325_s4 + $0x18] sm:$0xff] }
  0xcb   : > { %v2926_v15 = vadd.f32 %v880_v13, %v868_v14  ;;  %vm371_vm8 = vcmp.eq.s32.totalorder %v366_v11, %v370_v7  ;;  %vm372_vm9 = vcmp.eq.s32.totalorder %v367_v12, %v370_v7 }
  0xcd   : > { %v887_v16 = vsel %vm886_vm0, %v2926_v15, 0.0 }
  0xce   : > { %888 = vadd.xlane.f32.xlu0 %v887_v16 }
  0xd0   : > { %v869_v17 = vpop.f32.mrf.mxu0 }
  0xd1   : > { %v882_v18 = vpop.f32.mrf.mxu1 }
  0xd2   : > { %v2698_v18 = vmov 0.0  }
  0xd3   : > { %v3002_v19 = vsel %vm373_vm6, 1.0, %v2698_v18  ;;  %v3004_v20 = vsel %vm374_vm7, 1.0, %v2698_v18 }
 0x141   : > { %v889_v26 = vpop.xlane.xlu0 %888 }
 0x142   : > { %v897_v27 = vmul.f32 %v2930_v25, %v889_v26  ;;  %v1026_v26 = vperm.slane %v2975_v51, 4 }
 0x144   : > { %v898_v28 = vsub.f32 %v2926_v15, %v897_v27  ;;  %v3013_v27 = vsel %vm371_vm8, 1.0, %v2698_v18 }
 0x146   : > { %v899_v29 = vmul.f32 %v898_v28, %v898_v28 }
 0x148   : > { %v900_v30 = vsel %vm886_vm0, %v899_v29, 0.0 }
 0x149   : > { %901 = vadd.xlane.f32.xlu0 %v900_v30 }
 0x1bc   : > { %v902_v40 = vpop.xlane.xlu0 %901 }
 0x1bd   : > { %v903_v42 = vmul.f32 %v902_v40, %v2930_v25 }
 0x1bf   : > { %v904_v43 = vadd.f32 1e-06, %v903_v42 }
 0x1c1   : > { %2667 = vrsqrt.f32 %v904_v43  ;;  %vm911_vm3 = vweird.f32 %v904_v43 }
 0x1c7   : > { %v2668_v46 = vpop.eup %2667 }
 0x1c8   : > { %v906_v47 = vmul.f32 %v2668_v46, %v904_v43  ;;  %vm912_vm2 = vweird.f32 %v2668_v46 }
 0x1c9   : > { %vm913_vm4 = vmor %vm911_vm3, %vm912_vm2 }
 0x1ca   : > { %v907_v48 = vmul.f32 %v2668_v46, %v906_v47 }
 0x1cc   : > { %v908_v49 = vmul.f32 0.5, %v907_v48 }
 0x1ce   : > { %v909_v50 = vsub.f32 1.5, %v908_v49 }
 0x1d0   : > { %v910_v52 = vmul.f32 %v2668_v46, %v909_v50 }
 0x1d2   : > { %v914_v54 = vsel %vm913_vm4, %v2668_v46, %v910_v52 }
 0x1d3   : > { %v915_v55 = vmul.f32 %v914_v54, %v898_v28  ;;  %v3015_v28 = vsel %vm372_vm9, 1.0, %v2698_v18  ;;  %v383_v54 = vshra.s32 %v2991_v1, 3 }
 0x1d5   : > { %v917_v57 = vmul.f32 %v916_v53, %v915_v55  ;;  %vm3029_vm10 = vcmp.eq.s32.totalorder %v368_v5, %v383_v54  ;;  %vm3033_vm11 = vcmp.eq.s32.totalorder %v369_v6, %v383_v54  ;;  %vm3054_vm15 = vcmp.eq.s32.totalorder %v366_v11, %v383_v54  ;;  %v3201_v55 = vld [vmem:[%s3329_s8 + $0x10] sm:$0xff] }
 0x1d6   : > { %vm2271_vm12 = vmpackc.low %vm3033_vm11, %vm3029_vm10  ;;  %vm3060_vm1 = vcmp.eq.s32.totalorder %v367_v12, %v383_v54  ;;  %v1242_v54 = vperm.slane %v2975_v51, 7 }
 0x1d7   : > { %v919_v58 = vadd.f32 %v918_v56, %v917_v57  ;;  %v2699_v57 = vmov 1.0|1.0   ;;  %vm2273_vm2 = vmpackc.low %vm3060_vm1, %vm3054_vm15 }
 0x1d8   : > { %2272 = vmatpush.bf16.msk.msra.mxu0 %vm2271_vm12, %v2699_v57 }
 0x1d9   : > { %v928_v59 = vpack.c.bf16 %v919_v58, %v919_v58  ;;  %v394_v58 = vand.u32 7, %v2991_v1  ;;  %v1408_v1 = vperm.slane %v3201_v55, 0 }
 0x1db   : > { %2219 = vmatmul.msk.bf16.vlgmr.msrb.gmra.mxu2 %vm886_vm0, %v928_v59  ;;  %2244 = vmatmul.msk.bf16.vlgmr.msrb.gmra.mxu3 %vm886_vm0, %v928_v59  ;;  %vm395_vm13 = vcmp.lt.s32.totalorder %v394_v58, 5 }
 0x1dc   : > { %2274 = vmatpush.bf16.msk.msra.mxu0 %vm2273_vm2, %v2699_v57  ;;  %1208 = vmatpush.bf16.msrb.mxu2 %v2607_v8 }
 0x1eb   : > { %2269 = vmatmul.msk.bf16.vlgmr.msra.gmra.mxu2 %vm886_vm0, %v928_v59  ;;  %v2700_v59 = vmov -1e+30  }
 0x1ec   : > { %v3048_v60 = vsel %vm395_vm13, 0.0, %v2700_v59 }
 0x25e   : > { %v966_v2 = vpop.f32.mrf.mxu2  ;;  %v1013_v3 = vpop.f32.mrf.mxu3 }
 0x25f   : > { %v1014_v4 = vadd.f32 %v1013_v3, %v979_v62  ;;  %v967_v43 = vadd.f32 %v966_v2, %v929_v38  ;;  %v2609_v38 = vld [vmem:[%s3326_s5 + $0x8] sm:$0xff] }
 0x261   : > { %v1064_v9 = vpack.c.bf16 %v1014_v4, %v1014_v4  ;;  %v1101_v48 = vpack.c.bf16 %v967_v43, %v967_v43 }
 0x263   : > { %v1066_v10 = vunpack.c.l.b16 %v1064_v9 }
 0x265   : > { %v1067_v13 = vpack.c.b16 %v1066_v10, %v1066_v10  ;;  %v2605_v10 = vld [vmem:[%s3325_s4 + $0x8] sm:$0xff] }
 0x266   : > { %v968_v14 = vpop.f32.mrf.mxu2  ;;  %v1015_v16 = vpop.f32.mrf.mxu3 }
 0x267   : > { %v1071_v17 = vsel %vm1068_vm5, %v1064_v9, %v1067_v13  ;;  %v2606_v9 = vld [vmem:[%s3325_s4 + $0x10] sm:$0xff] }
 0x268   : > { %v1073_v21 = vunpack.c.l.bf16 %v1071_v17  ;;  %v1074_v22 = vunpack.c.h.bf16 %v1071_v17  ;;  %1209 = vmatpush.bf16.msrb.mxu2 %v2606_v9  ;;  %v2604_v17 = vld [vmem:[%s3325_s4] sm:$0xff] }
 0x26a   : > { %v1081_v23 = vmul.f32 %v1073_v21, %v3002_v19  ;;  %v1082_v24 = vmul.f32 %v1074_v22, %v3004_v20  ;;  %v1079_v32 = vmul.f32 %v1073_v21, %v3013_v27  ;;  %v1080_v33 = vmul.f32 %v1074_v22, %v3015_v28 }
 0x26c   : > { %v1084_v29 = vpack.c.bf16 %v1082_v24, %v1081_v23  ;;  %v1083_v36 = vpack.c.bf16 %v1080_v33, %v1079_v32  ;;  %1210 = vmatpush.bf16.msrb.mxu2 %v2605_v10  ;;  %v1176_v23 = vperm.slane %v2975_v51, 5 }
 0x26e   : > { %v1060_v30 = vpop.f32.mrf.mxu2  ;;  %v1109_v31 = vsel %vm886_vm0, %v1084_v29, 0  ;;  %v1106_v41 = vsel %vm886_vm0, %v1083_v36, 0 }
 0x26f   : > { %v1061_v34 = vadd.f32 %v1060_v30, %v1026_v26  ;;  %1117 = vmatpush.bf16.xpose.msra.mxu3 %v1109_v31 }
 0x270   : > { %1211 = vmatpush.bf16.msrb.mxu2 %v2604_v17 }
 0x271   : > { %v1085_v35 = vpack.c.bf16 %v1061_v34, %v1061_v34 }
 0x273   : > { %v1087_v37 = vunpack.c.l.b16 %v1085_v35 }
 0x275   : > { %v1088_v39 = vpack.c.b16 %v1087_v37, %v1087_v37  ;;  %v2611_v37 = vld [vmem:[%s3326_s5 + $0x18] sm:$0xff] }
 0x276   : > { %v1062_v40 = vpop.f32.mrf.mxu2 }
 0x277   : > { %v1091_v42 = vsel %vm1068_vm5, %v1085_v35, %v1088_v39  ;;  %1118 = vmatpush.bf16.xpose.msra.mxu3 %v1106_v41  ;;  %v2608_v39 = vld [vmem:[%s3326_s5] sm:$0xff]  ;;  %v2619_v40 = vld [vmem:[%s3327_s6 + $0x38] sm:$0xff] }
 0x278   : > { %v1093_v44 = vunpack.c.l.bf16 %v1091_v42  ;;  %v1094_v45 = vunpack.c.h.bf16 %v1091_v42  ;;  %1369 = vmatpush.bf16.msrb.mxu0 %v2619_v40  ;;  %v2622_v40 = vld [vmem:[%s3324_s3 + $0x70] sm:$0xff] }
 0x27a   : > { %v1097_v46 = vmul.f32 %v1093_v44, %v3002_v19  ;;  %v1098_v47 = vmul.f32 %v1094_v45, %v3004_v20  ;;  %v1095_v50 = vmul.f32 %v1093_v44, %v3013_v27  ;;  %v1096_v52 = vmul.f32 %v1094_v45, %v3015_v28 }
 0x27c   : > { %v1100_v49 = vpack.c.bf16 %v1098_v47, %v1097_v46  ;;  %v1099_v53 = vpack.c.bf16 %v1096_v52, %v1095_v50  ;;  %v1240_v50 = vperm.slane %v2975_v51, 6  ;;  %v2615_v51 = vld [vmem:[%s3327_s6 + $0x18] sm:$0xff] }
 0x27e   : > { %2270 = vmatmul.msk.bf16.vlgmr.msra.gmra.mxu3 %vm886_vm0, %v1101_v48  ;;  %1160 = vmatpush.bf16.msra.mxu1 %v1100_v49 }
 0x27f   : > { %1285 = vmatpush.bf16.msrb.mxu3 %v2611_v37 }
 0x282   : > { %1161 = vmatpush.bf16.msra.mxu1 %v1099_v53 }
 0x301   : > { %v1120_v62 = vpop.f32.mrf.mxu3 }
 0x302   : > { %v1121_v63 = vadd.f32 %v1120_v62, %v3048_v60 }
 0x304   : > { %v1125_v0 = vsel %vm1124_vm14, %v1121_v63, -inf }
 0x305   : > { %1126 = vmax.xlane.f32.xlu1 %v1125_v0  ;;  %v2617_v0 = vld [vmem:[%s3327_s6 + $0x28] sm:$0xff] }
 0x309   : > { %v1122_v2 = vpop.f32.mrf.mxu3 }
 0x30a   : > { %v2616_v2 = vld [vmem:[%s3327_s6 + $0x20] sm:$0xff] }
 0x378   : > { %v1127_v61 = vpop.xlane.xlu1 %1126 }
 0x379   : > { %v1128_v4 = vsub.f32 %v1121_v63, %v1127_v61  ;;  %v2618_v63 = vld [vmem:[%s3327_s6 + $0x30] sm:$0xff] }
 0x37a   : > { %1370 = vmatpush.bf16.msrb.mxu0 %v2618_v63  ;;  %v2614_v61 = vld [vmem:[%s3327_s6 + $0x10] sm:$0xff]  ;;  %v1410_v63 = vperm.slane %v3201_v55, 1 }
 0x37b   : > { %v1129_v5 = vmul.f32 1.442695, %v1128_v4  ;;  %v2613_v4 = vld [vmem:[%s3327_s6 + $0x8] sm:$0xff] }
 0x37d   : > { %2669 = vpow2.f32 %v1129_v5  ;;  %v2612_v5 = vld [vmem:[%s3327_s6] sm:$0xff] }
 0x37e   : > { %1371 = vmatpush.bf16.msrb.mxu0 %v2617_v0 }
 0x382   : > { %1372 = vmatpush.bf16.msrb.mxu0 %v2616_v2 }
 0x383   : > { %v2670_v6 = vpop.eup %2669 }
 0x384   : > { %v1131_v7 = vpack.c.bf16 %v2670_v6, %v2670_v6 }
 0x386   : > { %2275 = vmatmul.msk.bf16.vlgmr.msra.gmra.mxu0 %vm1124_vm14, %v1131_v7 }
 0x387   : > { %1373 = vmatpush.bf16.msrb.mxu0 %v2615_v51 }
 0x38b   : > { %1374 = vmatpush.bf16.msrb.mxu0 %v2614_v61 }
 0x38f   : > { %1375 = vmatpush.bf16.msrb.mxu0 %v2613_v4  ;;  %v1472_v4 = vperm.slane %v3201_v55, 3 }
 0x393   : > { %1376 = vmatpush.bf16.msrb.mxu0 %v2612_v5  ;;  %v1519_v5 = vperm.slane %v3201_v55, 4 }
 0x403   : > { %v1144_v11 = vpop.f32.mrf.mxu0 }
 0x404   : > { %2671 = vrcp.f32 %v1144_v11 }
 0x40a   : > { %v2672_v12 = vpop.eup %2671 }
 0x40b   : > { %v1149_v13 = vmul.f32 %v2672_v12, %v2670_v6  ;;  %v1146_v14 = vpop.f32.mrf.mxu0  ;;  %v885_v6 = vld [vmem:[%s3329_s8 + $0x8] sm:$0x3] }
 0x40c   : > { %v1253_v7 = vperm.slane %v885_v6, 1 }
 0x40d   : > { %v1150_v16 = vpack.c.bf16 %v1149_v13, %v1149_v13 }
 0x40f   : > { %2276 = vmatmul.msk.bf16.vlgmr.msra.gmra.mxu1 %vm1124_vm14, %v1150_v16 }
 0x48c   : > { %v1163_v18 = vpop.f32.mrf.mxu1 }
 0x48d   : > { %v1175_v21 = vpack.c.bf16 %v1163_v18, %v1163_v18 }
 0x48f   : > { %2293 = vmatmul.msk.bf16.vlgmr.msrb.gmra.mxu2 %vm886_vm0, %v1175_v21 }
 0x494   : > { %v1165_v22 = vpop.f32.mrf.mxu1 }
 0x512   : > { %v1213_v24 = vpop.f32.mrf.mxu2 }
 0x513   : > { %v1214_v26 = vadd.f32 %v1213_v24, %v1176_v23  ;;  %v1320_v24 = vperm.slane %v885_v6, 0 }
 0x515   : > { %v3091_v29 = vadd.f32 %v1214_v26, %v2926_v15  ;;  %v2610_v15 = vld [vmem:[%s3326_s5 + $0x10] sm:$0xff] }
 0x516   : > { %1286 = vmatpush.bf16.msrb.mxu3 %v2610_v15 }
 0x517   : > { %v1218_v30 = vsel %vm886_vm0, %v3091_v29, 0.0 }
 0x518   : > { %1219 = vadd.xlane.f32.xlu1 %v1218_v30 }
 0x51a   : > { %v1215_v31 = vpop.f32.mrf.mxu2  ;;  %1287 = vmatpush.bf16.msrb.mxu3 %v2609_v38  ;;  %v2623_v38 = vld [vmem:[%s3324_s3 + $0x78] sm:$0xff] }
 0x51b   : > { %1454 = vmatpush.bf16.msrb.mxu1 %v2623_v38 }
 0x51e   : > { %1288 = vmatpush.bf16.msrb.mxu3 %v2608_v39  ;;  %v2631_v39 = vld [vmem:[%s3324_s3 + $0xb8] sm:$0xff] }
 0x51f   : > { %1455 = vmatpush.bf16.msrb.mxu1 %v2622_v40 }
 0x522   : > { %1548 = vmatpush.bf16.msra.mxu3 %v2631_v39 }
 0x58b   : > { %v1220_v32 = vpop.xlane.xlu1 %1219 }
 0x58c   : > { %v1221_v33 = vmul.f32 %v1220_v32, %v2930_v25 }
 0x58e   : > { %v1222_v34 = vsub.f32 %v3091_v29, %v1221_v33 }
 0x590   : > { %v1223_v35 = vmul.f32 %v1222_v34, %v1222_v34 }
 0x592   : > { %v1224_v36 = vsel %vm886_vm0, %v1223_v35, 0.0 }
 0x593   : > { %1225 = vadd.xlane.f32.xlu2 %v1224_v36 }
 0x606   : > { %v1226_v41 = vpop.xlane.xlu2 %1225 }
 0x607   : > { %v1227_v42 = vmul.f32 %v1226_v41, %v2930_v25  ;;  %v2626_v41 = vld [vmem:[%s3324_s3 + $0x90] sm:$0xff] }
 0x609   : > { %v1228_v43 = vadd.f32 1e-06, %v1227_v42  ;;  %v2630_v42 = vld [vmem:[%s3324_s3 + $0xb0] sm:$0xff] }
 0x60a   : > { %1549 = vmatpush.bf16.msra.mxu3 %v2630_v42 }
 0x60b   : > { %2673 = vrsqrt.f32 %v1228_v43  ;;  %vm1235_vm4 = vweird.f32 %v1228_v43 }
 0x611   : > { %v2674_v44 = vpop.eup %2673 }
 0x612   : > { %v1230_v45 = vmul.f32 %v2674_v44, %v1228_v43  ;;  %vm1236_vm3 = vweird.f32 %v2674_v44  ;;  %v2621_v43 = vld [vmem:[%s3324_s3 + $0x68] sm:$0xff] }
 0x613   : > { %vm1237_vm6 = vmor %vm1235_vm4, %vm1236_vm3  ;;  %1456 = vmatpush.bf16.msrb.mxu1 %v2621_v43 }
 0x614   : > { %v1231_v46 = vmul.f32 %v2674_v44, %v1230_v45  ;;  %v2629_v45 = vld [vmem:[%s3324_s3 + $0xa8] sm:$0xff] }
 0x615   : > { %1550 = vmatpush.bf16.msra.mxu3 %v2629_v45 }
 0x616   : > { %v1232_v47 = vmul.f32 0.5, %v1231_v46  ;;  %v2620_v46 = vld [vmem:[%s3324_s3 + $0x60] sm:$0xff] }
 0x617   : > { %1457 = vmatpush.bf16.msrb.mxu1 %v2620_v46 }
 0x618   : > { %v1233_v48 = vsub.f32 1.5, %v1232_v47  ;;  %v2624_v47 = vld [vmem:[%s3324_s3 + $0x80] sm:$0xff] }
 0x61a   : > { %v1234_v49 = vmul.f32 %v2674_v44, %v1233_v48  ;;  %v2628_v48 = vld [vmem:[%s3324_s3 + $0xa0] sm:$0xff] }
 0x61b   : > { %1551 = vmatpush.bf16.msra.mxu3 %v2628_v48 }
 0x61c   : > { %v1238_v52 = vsel %vm1237_vm6, %v2674_v44, %v1234_v49  ;;  %v2625_v44 = vld [vmem:[%s3324_s3 + $0x88] sm:$0xff] }
 0x61d   : > { %v1239_v53 = vmul.f32 %v1238_v52, %v1222_v34 }
 0x61f   : > { %v1241_v58 = vmul.f32 %v1240_v50, %v1239_v53 }
 0x621   : > { %v1243_v59 = vadd.f32 %v1242_v54, %v1241_v58 }
 0x623   : > { %v1252_v62 = vpack.c.bf16 %v1243_v59, %v1243_v59 }
 0x625   : > { %2310 = vmatmul.msk.bf16.vlgmr.msrb.gmra.mxu3 %vm886_vm0, %v1252_v62 }
 0x6a8   : > { %v1290_v8 = vpop.f32.mrf.mxu3 }
 0x6a9   : > { %v1291_v9 = vadd.f32 %v1290_v8, %v1253_v7 }
 0x6ab   : > { %v1294_v10 = vmul.f32 %v1291_v9, %v1291_v9 }
 0x6ad   : > { %v1295_v11 = vmul.f32 %v1294_v10, %v1291_v9 }
 0x6af   : > { %v1296_v12 = vmul.f32 0.044715, %v1295_v11 }
 0x6b0   : > { %v1292_v13 = vpop.f32.mrf.mxu3 }
 0x6b1   : > { %v1297_v14 = vadd.f32 %v1296_v12, %v1291_v9 }
 0x6b3   : > { %v1298_v16 = vmul.f32 0.7978846, %v1297_v14 }
 0x6b5   : > { %2675 = vtanh.f32 %v1298_v16 }
 0x6bb   : > { %v2676_v17 = vpop.eup %2675 }
 0x6bc   : > { %v1300_v18 = vadd.f32 1.0, %v2676_v17 }
 0x6be   : > { %v1301_v21 = vmul.f32 0.5, %v1300_v18 }
 0x6c0   : > { %v1302_v22 = vmul.f32 %v1301_v21, %v1291_v9 }
 0x6c2   : > { %v1319_v23 = vpack.c.bf16 %v1302_v22, %v1302_v22 }
 0x6c4   : > { %1377 = vmatmul.bf16.vlgmr.msrb.gmra.mxu0 %v1319_v23 }
 0x741   : > { %v1378_v26 = vpop.f32.mrf.mxu0 }
 0x742   : > { %v1379_v30 = vadd.f32 %v1378_v26, %v1320_v24 }
 0x744   : > { %v3142_v31 = vadd.f32 %v1379_v30, %v3091_v29  ;;  %v2627_v29 = vld [vmem:[%s3324_s3 + $0x98] sm:$0xff] }
 0x745   : > { %1501 = vmatpush.bf16.msra.mxu2 %v2627_v29 }
 0x746   : > { %v1386_v32 = vsel %vm886_vm0, %v3142_v31, 0.0 }
 0x747   : > { %1387 = vadd.xlane.f32.xlu2 %v1386_v32 }
 0x749   : > { %v1380_v33 = vpop.f32.mrf.mxu0  ;;  %1502 = vmatpush.bf16.msra.mxu2 %v2626_v41 }
 0x74d   : > { %1503 = vmatpush.bf16.msra.mxu2 %v2625_v44 }
 0x751   : > { %1504 = vmatpush.bf16.msra.mxu2 %v2624_v47 }
 0x755   : > { %2422 = vmatpush.bf16.msk.msrb.mxu2 %vm2271_vm12, %v2699_v57 }
 0x759   : > { %2424 = vmatpush.bf16.msk.msrb.mxu2 %vm2273_vm2, %v2699_v57 }
 0x7ba   : > { %v1388_v34 = vpop.xlane.xlu2 %1387 }
 0x7bb   : > { %v1389_v35 = vmul.f32 %v1388_v34, %v2930_v25 }
 0x7bd   : > { %v1390_v36 = vsub.f32 %v3142_v31, %v1389_v35 }
 0x7bf   : > { %v1391_v37 = vmul.f32 %v1390_v36, %v1390_v36 }
 0x7c1   : > { %v1392_v15 = vsel %vm886_vm0, %v1391_v37, 0.0 }
 0x7c2   : > { %1393 = vadd.xlane.f32.xlu0 %v1392_v15 }
 0x835   : > { %v1394_v49 = vpop.xlane.xlu0 %1393 }
 0x836   : > { %v1395_v50 = vmul.f32 %v1394_v49, %v2930_v25 }
 0x838   : > { %v1396_v52 = vadd.f32 1e-06, %v1395_v50 }
 0x83a   : > { %2677 = vrsqrt.f32 %v1396_v52  ;;  %vm1403_vm8 = vweird.f32 %v1396_v52 }
 0x840   : > { %v2678_v53 = vpop.eup %2677 }
 0x841   : > { %v1398_v54 = vmul.f32 %v2678_v53, %v1396_v52  ;;  %vm1404_vm7 = vweird.f32 %v2678_v53 }
 0x842   : > { %vm1405_vm9 = vmor %vm1403_vm8, %vm1404_vm7 }
 0x843   : > { %v1399_v58 = vmul.f32 %v2678_v53, %v1398_v54  ;;  %v2635_v54 = vld [vmem:[%s3325_s4 + $0x38] sm:$0xff] }
 0x844   : > { %1696 = vmatpush.bf16.msra.mxu0 %v2635_v54 }
 0x845   : > { %v1400_v56 = vmul.f32 0.5, %v1399_v58  ;;  %v2633_v58 = vld [vmem:[%s3325_s4 + $0x28] sm:$0xff] }
 0x847   : > { %v1401_v59 = vsub.f32 1.5, %v1400_v56 }
 0x849   : > { %v1402_v62 = vmul.f32 %v2678_v53, %v1401_v59 }
 0x84b   : > { %v1406_v3 = vsel %vm1405_vm9, %v2678_v53, %v1402_v62 }
 0x84c   : > { %v1407_v57 = vmul.f32 %v1406_v3, %v1390_v36 }
 0x84e   : > { %v1409_v0 = vmul.f32 %v1408_v1, %v1407_v57  ;;  %v2632_v57 = vld [vmem:[%s3325_s4 + $0x20] sm:$0xff] }
 0x850   : > { %v1411_v2 = vadd.f32 %v1410_v63, %v1409_v0 }
 0x852   : > { %v1421_v51 = vpack.c.bf16 %v1411_v2, %v1411_v2 }
 0x854   : > { %2369 = vmatmul.msk.bf16.vlgmr.msrb.gmra.mxu1 %vm886_vm0, %v1421_v51  ;;  %2394 = vmatmul.msk.bf16.vlgmr.msra.gmra.mxu2 %vm886_vm0, %v1421_v51 }
 0x855   : > { %2419 = vmatmul.msk.bf16.vlgmr.msra.gmra.mxu3 %vm886_vm0, %v1421_v51  ;;  %v1664_v51 = vperm.slane %v3201_v55, 5 }
 0x8d1   : > { %v1459_v61 = vpop.f32.mrf.mxu1 }
 0x8d7   : > { %v1506_v6 = vpop.f32.mrf.mxu2 }
 0x8d8   : > { %v1507_v7 = vadd.f32 %v1506_v6, %v1472_v4  ;;  %v1553_v8 = vpop.f32.mrf.mxu3 }
 0x8d9   : > { %v1554_v9 = vadd.f32 %v1553_v8, %v1519_v5  ;;  %v1461_v10 = vpop.f32.mrf.mxu1 }
 0x8da   : > { %v1557_v11 = vpack.c.bf16 %v1507_v7, %v1507_v7 }
 0x8db   : > { %v1573_v12 = vpack.c.bf16 %v1554_v9, %v1554_v9 }
 0x8dc   : > { %v1559_v13 = vunpack.c.l.b16 %v1557_v11 }
 0x8dd   : > { %v1575_v14 = vunpack.c.l.b16 %v1573_v12 }
 0x8de   : > { %v1560_v16 = vpack.c.b16 %v1559_v13, %v1559_v13  ;;  %v2639_v13 = vld [vmem:[%s3326_s5 + $0x38] sm:$0xff] }
 0x8df   : > { %v1576_v17 = vpack.c.b16 %v1575_v14, %v1575_v14  ;;  %v1508_v18 = vpop.f32.mrf.mxu2  ;;  %v2637_v14 = vld [vmem:[%s3326_s5 + $0x28] sm:$0xff] }
 0x8e0   : > { %v1563_v21 = vsel %vm1068_vm5, %v1557_v11, %v1560_v16  ;;  %v1555_v22 = vpop.f32.mrf.mxu3  ;;  %v2636_v16 = vld [vmem:[%s3326_s5 + $0x20] sm:$0xff] }
 0x8e1   : > { %v1565_v23 = vunpack.c.l.bf16 %v1563_v21  ;;  %v1566_v24 = vunpack.c.h.bf16 %v1563_v21  ;;  %v1579_v26 = vsel %vm1068_vm5, %v1573_v12, %v1576_v17  ;;  %v2647_v17 = vld [vmem:[%s3327_s6 + $0x78] sm:$0xff] }
 0x8e2   : > { %v1581_v30 = vunpack.c.l.bf16 %v1579_v26  ;;  %v1582_v32 = vunpack.c.h.bf16 %v1579_v26  ;;  %1859 = vmatpush.bf16.msra.mxu2 %v2647_v17 }
 0x8e3   : > { %v1569_v33 = vmul.f32 %v1565_v23, %v3002_v19  ;;  %v1570_v34 = vmul.f32 %v1566_v24, %v3004_v20  ;;  %v1567_v40 = vmul.f32 %v1565_v23, %v3013_v27  ;;  %v1568_v41 = vmul.f32 %v1566_v24, %v3015_v28 }
 0x8e4   : > { %v1585_v35 = vmul.f32 %v1581_v30, %v3002_v19  ;;  %v1586_v36 = vmul.f32 %v1582_v32, %v3004_v20  ;;  %v1583_v38 = vmul.f32 %v1581_v30, %v3013_v27  ;;  %v1584_v29 = vmul.f32 %v1582_v32, %v3015_v28 }
 0x8e5   : > { %v1572_v37 = vpack.c.bf16 %v1570_v34, %v1569_v33  ;;  %v1571_v43 = vpack.c.bf16 %v1568_v41, %v1567_v40  ;;  %v1422_v19 = vperm.slane %v3201_v55, 2  ;;  %v1728_v34 = vperm.slane %v3201_v55, 6  ;;  %v2645_v40 = vld [vmem:[%s3327_s6 + $0x68] sm:$0xff]  ;;  %v2644_v41 = vld [vmem:[%s3327_s6 + $0x60] sm:$0xff] }
 0x8e6   : > { %v1588_v15 = vpack.c.bf16 %v1586_v36, %v1585_v35  ;;  %v1587_v42 = vpack.c.bf16 %v1584_v29, %v1583_v38 }
 0x8e7   : > { %v1597_v39 = vsel %vm886_vm0, %v1572_v37, 0  ;;  %v1594_v20 = vsel %vm886_vm0, %v1571_v43, 0  ;;  %v1460_v44 = vadd.f32 %v1459_v61, %v1422_v19  ;;  %v1730_v37 = vperm.slane %v3201_v55, 7  ;;  %v2643_v55 = vld [vmem:[%s3327_s6 + $0x58] sm:$0xff]  ;;  %v2641_v43 = vld [vmem:[%s3327_s6 + $0x48] sm:$0xff]  ;;  %v2640_v19 = vld [vmem:[%s3327_s6 + $0x40] sm:$0xff] }
 0x8e8   : > { %1647 = vmatpush.bf16.msrb.mxu3 %v1588_v15  ;;  %1605 = vmatpush.bf16.xpose.msra.mxu1 %v1597_v39  ;;  %v2646_v39 = vld [vmem:[%s3327_s6 + $0x70] sm:$0xff] }
 0x8e9   : > { %v1589_v45 = vpack.c.bf16 %v1460_v44, %v1460_v44  ;;  %1860 = vmatpush.bf16.msra.mxu2 %v2646_v39 }
 0x8ec   : > { %1648 = vmatpush.bf16.msrb.mxu3 %v1587_v42  ;;  %v2642_v42 = vld [vmem:[%s3327_s6 + $0x50] sm:$0xff] }
 0x8ed   : > { %1861 = vmatpush.bf16.msra.mxu2 %v2645_v40 }
 0x8f0   : > { %1606 = vmatpush.bf16.xpose.msra.mxu1 %v1594_v20  ;;  %v2344_v20 = vld [vmem:[%s3329_s8 + $0x18] sm:$0x3] }
 0x8f1   : > { %1862 = vmatpush.bf16.msra.mxu2 %v2644_v41  ;;  %v1742_v44 = vperm.slane %v2344_v20, 1 }
 0x8f5   : > { %1863 = vmatpush.bf16.msra.mxu2 %v2643_v55 }
 0x8f7   : > { %2420 = vmatmul.msk.bf16.vlgmr.msra.gmra.mxu1 %vm886_vm0, %v1589_v45 }
 0x8f8   : > { %1774 = vmatpush.bf16.msrb.mxu1 %v2639_v13 }
 0x8f9   : > { %1864 = vmatpush.bf16.msra.mxu2 %v2642_v42 }
 0x8fd   : > { %1865 = vmatpush.bf16.msra.mxu2 %v2641_v43 }
 0x901   : > { %1866 = vmatpush.bf16.msra.mxu2 %v2640_v19 }
 0x974   : > { %v1608_v46 = vpop.f32.mrf.mxu1 }
 0x975   : > { %v1609_v47 = vadd.f32 %v1608_v46, %v3048_v60  ;;  %v2634_v60 = vld [vmem:[%s3325_s4 + $0x30] sm:$0xff] }
 0x976   : > { %1697 = vmatpush.bf16.msra.mxu0 %v2634_v60 }
 0x977   : > { %v1612_v27 = vsel %vm1124_vm14, %v1609_v47, -inf }
 0x978   : > { %1613 = vmax.xlane.f32.xlu1 %v1612_v27 }
 0x97a   : > { %1698 = vmatpush.bf16.msra.mxu0 %v2633_v58 }
 0x97c   : > { %v1610_v28 = vpop.f32.mrf.mxu1 }
 0x97e   : > { %1699 = vmatpush.bf16.msra.mxu0 %v2632_v57 }
 0x9eb   : > { %v1614_v48 = vpop.xlane.xlu1 %1613 }
 0x9ec   : > { %v1615_v49 = vsub.f32 %v1609_v47, %v1614_v48 }
 0x9ee   : > { %v1616_v50 = vmul.f32 1.442695, %v1615_v49 }
 0x9f0   : > { %2679 = vpow2.f32 %v1616_v50 }
 0x9f6   : > { %v2680_v52 = vpop.eup %2679 }
 0x9f7   : > { %v1618_v53 = vpack.c.bf16 %v2680_v52, %v2680_v52 }
 0x9f9   : > { %2425 = vmatmul.msk.bf16.vlgmr.msrb.gmra.mxu2 %vm1124_vm14, %v1618_v53 }
 0xa7c   : > { %v1631_v56 = vpop.f32.mrf.mxu2 }
 0xa7d   : > { %2681 = vrcp.f32 %v1631_v56  ;;  %v1810_v56 = vperm.slane %v2344_v20, 0 }
 0xa83   : > { %v2682_v59 = vpop.eup %2681 }
 0xa84   : > { %v1636_v62 = vmul.f32 %v2682_v59, %v2680_v52  ;;  %v1633_v1 = vpop.f32.mrf.mxu2 }
 0xa86   : > { %v1637_v3 = vpack.c.bf16 %v1636_v62, %v1636_v62 }
 0xa88   : > { %2426 = vmatmul.msk.bf16.vlgmr.msrb.gmra.mxu3 %vm1124_vm14, %v1637_v3 }
 0xb0b   : > { %v1650_v63 = vpop.f32.mrf.mxu3 }
 0xb0c   : > { %v1663_v0 = vpack.c.bf16 %v1650_v63, %v1650_v63 }
 0xb0e   : > { %2451 = vmatmul.msk.bf16.vlgmr.msra.gmra.mxu0 %vm886_vm0, %v1663_v0 }
 0xb13   : > { %v1652_v2 = vpop.f32.mrf.mxu3 }
 0xb8b   : > { %v1701_v61 = vpop.f32.mrf.mxu0 }
 0xb8c   : > { %v1702_v4 = vadd.f32 %v1701_v61, %v1664_v51 }
 0xb8e   : > { %v3243_v5 = vadd.f32 %v1702_v4, %v3142_v31  ;;  %v2638_v31 = vld [vmem:[%s3326_s5 + $0x30] sm:$0xff]  ;;  %v2651_v4 = vld [vmem:[%s3328_s7 + $0x18] sm:$0xff] }
 0xb8f   : > { %1775 = vmatpush.bf16.msrb.mxu1 %v2638_v31  ;;  %1941 = vmatpush.bf16.msra.mxu3 %v2651_v4 }
 0xb90   : > { %v1706_v6 = vsel %vm886_vm0, %v3243_v5, 0.0 }
 0xb91   : > { %1707 = vadd.xlane.f32.xlu2 %v1706_v6  ;;  %v2649_v6 = vld [vmem:[%s3328_s7 + $0x8] sm:$0xff] }
 0xb93   : > { %v1703_v7 = vpop.f32.mrf.mxu0  ;;  %1776 = vmatpush.bf16.msrb.mxu1 %v2637_v14  ;;  %v1873_v14 = vld [vmem:[%s3330_s9] sm:$0x7] }
 0xb94   : > { %v2648_v7 = vld [vmem:[%s3328_s7] sm:$0xff] }
 0xb97   : > { %1777 = vmatpush.bf16.msrb.mxu1 %v2636_v16 }
 0xc04   : > { %v1708_v8 = vpop.xlane.xlu2 %1707 }
 0xc05   : > { %v1709_v9 = vmul.f32 %v1708_v8, %v2930_v25 }
 0xc07   : > { %v1710_v10 = vsub.f32 %v3243_v5, %v1709_v9 }
 0xc09   : > { %v1711_v11 = vmul.f32 %v1710_v10, %v1710_v10 }
 0xc0b   : > { %v1712_v12 = vsel %vm886_vm0, %v1711_v11, 0.0 }
 0xc0c   : > { %1713 = vadd.xlane.f32.xlu0 %v1712_v12 }
 0xc7f   : > { %v1714_v18 = vpop.xlane.xlu0 %1713 }
 0xc80   : > { %v1715_v21 = vmul.f32 %v1714_v18, %v2930_v25  ;;  %v1896_v18 = vperm.slane %v1873_v14, 0 }
 0xc82   : > { %v1716_v22 = vadd.f32 1e-06, %v1715_v21 }
 0xc84   : > { %2683 = vrsqrt.f32 %v1716_v22  ;;  %vm1723_vm10 = vweird.f32 %v1716_v22 }
 0xc8a   : > { %v2684_v23 = vpop.eup %2683 }
 0xc8b   : > { %v1718_v24 = vmul.f32 %v2684_v23, %v1716_v22  ;;  %vm1724_vm5 = vweird.f32 %v2684_v23 }
 0xc8c   : > { %vm1725_vm11 = vmor %vm1723_vm10, %vm1724_vm5 }
 0xc8d   : > { %v1719_v26 = vmul.f32 %v2684_v23, %v1718_v24 }
 0xc8f   : > { %v1720_v30 = vmul.f32 0.5, %v1719_v26 }
 0xc91   : > { %v1721_v32 = vsub.f32 1.5, %v1720_v30  ;;  %v1909_v30 = vperm.slane %v1873_v14, 2 }
 0xc93   : > { %v1722_v33 = vmul.f32 %v2684_v23, %v1721_v32 }
 0xc95   : > { %v1726_v35 = vsel %vm1725_vm11, %v2684_v23, %v1722_v33 }
 0xc96   : > { %v1727_v36 = vmul.f32 %v1726_v35, %v1710_v10 }
 0xc98   : > { %v1729_v15 = vmul.f32 %v1728_v34, %v1727_v36 }
 0xc9a   : > { %v1731_v38 = vadd.f32 %v1730_v37, %v1729_v15 }
 0xc9c   : > { %v1741_v29 = vpack.c.bf16 %v1731_v38, %v1731_v38 }
 0xc9e   : > { %2476 = vmatmul.msk.bf16.vlgmr.msrb.gmra.mxu1 %vm886_vm0, %v1741_v29 }
 0xd1b   : > { %v1779_v45 = vpop.f32.mrf.mxu1 }
 0xd1c   : > { %v1780_v46 = vadd.f32 %v1779_v45, %v1742_v44 }
 0xd1e   : > { %v1783_v47 = vmul.f32 %v1780_v46, %v1780_v46 }
 0xd20   : > { %v1784_v27 = vmul.f32 %v1783_v47, %v1780_v46 }
 0xd22   : > { %v1785_v28 = vmul.f32 0.044715, %v1784_v27 }
 0xd23   : > { %v1781_v48 = vpop.f32.mrf.mxu1 }
 0xd24   : > { %v1786_v49 = vadd.f32 %v1785_v28, %v1780_v46 }
 0xd26   : > { %v1787_v50 = vmul.f32 0.7978846, %v1786_v49 }
 0xd28   : > { %2685 = vtanh.f32 %v1787_v50 }
 0xd2e   : > { %v2686_v52 = vpop.eup %2685 }
 0xd2f   : > { %v1789_v53 = vadd.f32 1.0, %v2686_v52 }
 0xd31   : > { %v1790_v54 = vmul.f32 0.5, %v1789_v53 }
 0xd33   : > { %v1791_v60 = vmul.f32 %v1790_v54, %v1780_v46 }
 0xd35   : > { %v1809_v58 = vpack.c.bf16 %v1791_v60, %v1791_v60 }
 0xd37   : > { %1867 = vmatmul.bf16.vlgmr.msra.gmra.mxu2 %v1809_v58 }
 0xdba   : > { %v1868_v59 = vpop.f32.mrf.mxu2 }
 0xdbb   : > { %v1869_v62 = vadd.f32 %v1868_v59, %v1810_v56 }
 0xdbd   : > { %v1872_v1 = vadd.f32 %v1869_v62, %v3243_v5  ;;  %v2650_v5 = vld [vmem:[%s3328_s7 + $0x10] sm:$0xff] }
 0xdbe   : > { %1942 = vmatpush.bf16.msra.mxu3 %v2650_v5 }
 0xdbf   : > { %v1874_v3 = vsel %vm886_vm0, %v1872_v1, 0.0 }
 0xdc0   : > { %1875 = vadd.xlane.f32.xlu1 %v1874_v3 }
 0xdc2   : > { %v1870_v57 = vpop.f32.mrf.mxu2  ;;  %1943 = vmatpush.bf16.msra.mxu3 %v2649_v6 }
 0xdc6   : > { %1944 = vmatpush.bf16.msra.mxu3 %v2648_v7 }
 0xe33   : > { %v1876_v63 = vpop.xlane.xlu1 %1875 }
 0xe34   : > { %v1877_v0 = vmul.f32 %v1876_v63, %v2930_v25 }
 0xe36   : > { %v1878_v2 = vsub.f32 %v1872_v1, %v1877_v0 }
 0xe38   : > { %v1879_v51 = vmul.f32 %v1878_v2, %v1878_v2 }
 0xe3a   : > { %v1880_v61 = vsel %vm886_vm0, %v1879_v51, 0.0 }
 0xe3b   : > { %1881 = vadd.xlane.f32.xlu2 %v1880_v61 }
 0xeae   : > { %v1882_v8 = vpop.xlane.xlu2 %1881 }
 0xeaf   : > { %v1883_v9 = vmul.f32 %v1882_v8, %v2930_v25  ;;  %v1898_v25 = vperm.slane %v1873_v14, 1 }
 0xeb1   : > { %v1884_v10 = vadd.f32 1e-06, %v1883_v9 }
 0xeb3   : > { %2687 = vrsqrt.f32 %v1884_v10  ;;  %vm1891_vm13 = vweird.f32 %v1884_v10 }
 0xeb9   : > { %v2688_v11 = vpop.eup %2687 }
 0xeba   : > { %v1886_v12 = vmul.f32 %v2688_v11, %v1884_v10  ;;  %vm1892_vm12 = vweird.f32 %v2688_v11 }
 0xebb   : > { %vm1893_vm14 = vmor %vm1891_vm13, %vm1892_vm12 }
 0xebc   : > { %v1887_v13 = vmul.f32 %v2688_v11, %v1886_v12 }
 0xebe   : > { %v1888_v31 = vmul.f32 0.5, %v1887_v13 }
 0xec0   : > { %v1889_v16 = vsub.f32 1.5, %v1888_v31 }
 0xec2   : > { %v1890_v17 = vmul.f32 %v2688_v11, %v1889_v16 }
 0xec4   : > { %v1894_v21 = vsel %vm1893_vm14, %v2688_v11, %v1890_v17 }
 0xec5   : > { %v1895_v22 = vmul.f32 %v1894_v21, %v1878_v2 }
 0xec7   : > { %v1897_v23 = vmul.f32 %v1896_v18, %v1895_v22 }
 0xec9   : > { %v1899_v24 = vadd.f32 %v1898_v25, %v1897_v23 }
 0xecb   : > { %v1908_v26 = vpack.c.bf16 %v1899_v24, %v1899_v24 }
 0xecd   : > { %2541 = vmatmul.msk.bf16.vlgmr.msra.gmra.mxu3 %vm886_vm0, %v1908_v26 }
 0xf50   : > { %v1946_v32 = vpop.f32.mrf.mxu3 }
 0xf51   : > { %v1947_v33 = vadd.f32 %v1946_v32, %v1909_v30 }
 0xf53   : > { %1950 = vst [vmem:[%s357_s18] sm:$0xff] %v1947_v33 }
 0xf58   : > { %v1948_v34 = vpop.f32.mrf.mxu3 }
 0xf59 PF: > { %s20_s13 = sadd.s32 1, %s2695_s13  }
 0xf5a   : > { %p17_p4 = scmp.ge.s32.totalorder %s20_s13, 4  }
 0xf5c   :  { %19 = sbr.rel (!%p17_p4) target bundleno = 1 (0x1), region = 99 }

</bundles_post_ra>
